<compile_context>
chip_gen: v6e
topology: v6e:2x2x1
jax: 0.10.0
libtpu: 0.0.40
codegen_flags: <defaults>
</compile_context>

<pallas_src>
import jax
import jax.numpy as jnp
from jax.experimental import pallas as pl
from jax.experimental.pallas import tpu as pltpu


def _round_up(x, m):
    return (x + m - 1) // m * m


def _vmem_capacity_bytes():
    """Physical VMEM of the current chip; 64 MiB fallback (v7x, the smallest)."""
    try:
        return int(pltpu.get_tpu_info().vmem_capacity_bytes)
    except Exception:
        return 64 * 1024 * 1024


# ---------------------------------------------------------------------------
# Kernels
# ---------------------------------------------------------------------------

def ffn_resident_kernel(x_ref, w1_ref, b1_ref, w2_ref, b2_ref, out_ref):
    """relu(x @ W1 + b1) @ W2 + b2 with the whole W1/W2 resident in VMEM.

    grid = (batch_tiles,): no reduction axis, no accumulator scratch, no
    accumulator read-modify-write -- out_ref is written exactly once.
    """
    h = jnp.dot(x_ref[...], w1_ref[...], preferred_element_type=jnp.float32)
    h = jnp.maximum(h + b1_ref[...], 0.0)
    out = jnp.dot(h.astype(w2_ref.dtype), w2_ref[...],
                  preferred_element_type=jnp.float32)
    out_ref[...] = (out + b2_ref[...]).astype(out_ref.dtype)


def ffn_streaming_kernel(x_ref, w1_ref, b1_ref, w2_ref, b2_ref, out_ref, acc_ref):
    """One (batch-tile, F-chunk) step; fallback when W1/W2 don't fit VMEM."""
    f = pl.program_id(1)

    @pl.when(f == 0)
    def _init():
        # Fold the output bias into the accumulator init: removes a (tm, H)
        # VPU add and one extra accumulator pass at finalize.
        acc_ref[...] = jnp.broadcast_to(b2_ref[...].astype(jnp.float32),
                                        acc_ref.shape)

    h = jnp.dot(x_ref[...], w1_ref[...], preferred_element_type=jnp.float32)
    h = jnp.maximum(h + b1_ref[...], 0.0)   # bias + ReLU per F-chunk is exact
    acc_ref[...] += jnp.dot(h.astype(w2_ref.dtype), w2_ref[...],
                            preferred_element_type=jnp.float32)

    @pl.when(f == pl.num_programs(1) - 1)
    def _finalize():
        out_ref[...] = acc_ref[...].astype(out_ref.dtype)


# ---------------------------------------------------------------------------
# Wrapper (ExpertBackend.forward equivalent)
# ---------------------------------------------------------------------------

def expert_backend_forward(x, w1, b1, w2, b2, *, block_m=512, block_f=512,
                           force_streaming=False):
    """Equivalent of ExpertBackend.forward(x) -> tuple of output tensors."""
    B, H = x.shape
    H2, F = w1.shape
    assert H2 == H and w2.shape == (F, H)
    assert b1.shape == (1, F) and b2.shape == (1, H)
    # Lane-dense last dims (multiples of 128): unmasked stores, full-width MXU.
    assert H % 128 == 0, "hidden dim must be a multiple of 128"
    assert F % 128 == 0, "FFN dim must be a multiple of 128"

    # --- batch tiling -------------------------------------------------------
    # >= cdiv(B, block_m) tiles, and >= 2 tiles whenever the batch spans more
    # than one sublane row, so the "parallel" batch axis can shard across both
    # TensorCores on v7x (v5e/v6e have a single TC and are unaffected).
    n_tiles = max(pl.cdiv(B, block_m), 2 if B > 8 else 1)
    # Size tiles to the batch (not to block_m): at most ~7 rows of padding per
    # tile, avoiding the ~2x waste of e.g. B=257 -> b_pad=512.
    tm = _round_up(pl.cdiv(B, n_tiles), 8)
    n_tiles = pl.cdiv(B, tm)
    b_pad = n_tiles * tm
    if b_pad != B:
        # NOTE: the pad (and out[:B] below) are extra HBM copies; padded rows
        # compute relu(b1) @ W2 + b2 and are discarded -- correct, just wasted.
        x = jnp.pad(x, ((0, b_pad - B), (0, 0)))

    act_bytes = jnp.dtype(x.dtype).itemsize
    w_bytes = jnp.dtype(w1.dtype).itemsize

    vmem_budget = int(_vmem_capacity_bytes() * 0.9)   # never request > physical
    flops = 4 * b_pad * H * F                          # two matmuls

    # --- resident-weight footprint -------------------------------------------
    resident_bytes = (
        (H * F + F * H) * w_bytes          # W1, W2 resident (single buffer)
        + 8 * (F + H) * w_bytes            # b1, b2 (sublane padded)
        + 2 * tm * H * act_bytes           # x tile, double buffered
        + 2 * tm * H * act_bytes           # out tile, double buffered
        + tm * F * 4 + tm * H * 4          # f32 intermediates (h, out)
    )
    use_resident = (not force_streaming) and int(resident_bytes * 1.25) <= vmem_budget

    def _const_spec(shape, index_map):
        # Block whose index never changes across the grid: DMA'd from HBM
        # exactly once and kept resident.  Single-buffer it when this Pallas
        # supports pipeline_mode (halves its VMEM footprint, which is what
        # keeps f32 resident weights feasible on v7x's 64 MiB).
        try:
            return pl.BlockSpec(shape, index_map, pipeline_mode=pl.Buffered(1))
        except (TypeError, AttributeError):
            return pl.BlockSpec(shape, index_map)

    def _run_resident():
        vmem_limit = int(min(max(resident_bytes * 1.25, 16 * 1024 * 1024),
                             vmem_budget))
        cost = pl.CostEstimate(
            flops=flops, transcendentals=0,
            bytes_accessed=(2 * b_pad * H * act_bytes      # x in, out out
                            + 2 * H * F * w_bytes          # weights, once
                            + (F + H) * w_bytes))          # biases
        return pl.pallas_call(
            ffn_resident_kernel,
            out_shape=jax.ShapeDtypeStruct((b_pad, H), x.dtype),
            grid_spec=pltpu.PrefetchScalarGridSpec(
                num_scalar_prefetch=0,
                grid=(n_tiles,),
                in_specs=[
                    pl.BlockSpec((tm, H), lambda i: (i, 0)),     # x batch tile
                    _const_spec((H, F), lambda i: (0, 0)),       # W1 (resident)
                    _const_spec((1, F), lambda i: (0, 0)),       # b1 (resident)
                    _const_spec((F, H), lambda i: (0, 0)),       # W2 (resident)
                    _const_spec((1, H), lambda i: (0, 0)),       # b2 (resident)
                ],
                out_specs=pl.BlockSpec((tm, H), lambda i: (i, 0)),
            ),
            compiler_params=pltpu.CompilerParams(
                dimension_semantics=("parallel",),
                vmem_limit_bytes=vmem_limit,
            ),
            cost_estimate=cost,
        )(x, w1, b1, w2, b2)

    def _run_streaming():
        # Largest lane-dense F-chunk <= block_f that divides F.
        tf = max(128, (min(block_f, F) // 128) * 128)
        while F % tf:
            tf -= 128
        stream_bytes = (
            2 * tm * H * act_bytes          # x tile
            + 2 * H * tf * w_bytes          # W1 chunk
            + 2 * tf * H * w_bytes          # W2 chunk
            + 2 * 8 * tf * w_bytes          # b1 chunk (sublane padded)
            + 2 * 8 * H * w_bytes           # b2
            + 2 * tm * H * act_bytes        # out tile
            + tm * H * 4                    # f32 accumulator
            + tm * tf * 4                   # f32 intermediate h
        )
        vmem_limit = int(min(max(stream_bytes * 1.25, 16 * 1024 * 1024),
                             vmem_budget))
        cost = pl.CostEstimate(
            flops=flops, transcendentals=0,
            bytes_accessed=(2 * b_pad * H * act_bytes
                            # weights re-streamed once per batch tile:
                            + n_tiles * 2 * H * F * w_bytes
                            + (F + H) * w_bytes))
        return pl.pallas_call(
            ffn_streaming_kernel,
            out_shape=jax.ShapeDtypeStruct((b_pad, H), x.dtype),
            grid_spec=pltpu.PrefetchScalarGridSpec(
                num_scalar_prefetch=0,
                grid=(n_tiles, F // tf),
                in_specs=[
                    pl.BlockSpec((tm, H), lambda i, f: (i, 0)),   # x batch tile
                    pl.BlockSpec((H, tf), lambda i, f: (0, f)),   # W1 F-chunk
                    pl.BlockSpec((1, tf), lambda i, f: (0, f)),   # b1 F-chunk
                    pl.BlockSpec((tf, H), lambda i, f: (f, 0)),   # W2 F-chunk
                    pl.BlockSpec((1, H), lambda i, f: (0, 0)),    # b2 (constant)
                ],
                out_specs=pl.BlockSpec((tm, H), lambda i, f: (i, 0)),
                scratch_shapes=[pltpu.VMEM((tm, H), jnp.float32)],
            ),
            compiler_params=pltpu.CompilerParams(
                dimension_semantics=("parallel", "arbitrary"),
                vmem_limit_bytes=vmem_limit,
            ),
            cost_estimate=cost,
        )(x, w1, b1, w2, b2)

    if use_resident:
        try:
            out = _run_resident()
        except Exception:
            # Robust fallback (e.g. pl.Buffered(1) unsupported by this Pallas
            # build, or a marginal VMEM miss): the streaming path always fits.
            out = _run_streaming()
    else:
        out = _run_streaming()

    if b_pad != B:
        out = out[:B]
    # ExpertBackend.forward returns tuple(nested_flatten(outputs)); the FFN
    # expert produces a single tensor, so this is a 1-tuple.
    return (out,)


if __name__ == "__main__":
    key = jax.random.PRNGKey(0)
    B, H = 32, 128          # batch is dim 0 per the ExpertBackend contract
    F = 4 * H               # standard hivemind FFN expansion -> 512 (lane-dense)

    k_x, k_w1, k_b1, k_w2, k_b2 = jax.random.split(key, 5)
    x = jax.random.normal(k_x, (B, H), dtype=jnp.float32)
    # Deterministic synthetic parameters (scaled like default Linear init).
    w1 = jax.random.normal(k_w1, (H, F), dtype=jnp.float32) * (1.0 / jnp.sqrt(H))
    b1 = jax.random.normal(k_b1, (1, F), dtype=jnp.float32) * 0.01
    w2 = jax.random.normal(k_w2, (F, H), dtype=jnp.float32) * (1.0 / jnp.sqrt(F))
    b2 = jax.random.normal(k_b2, (1, H), dtype=jnp.float32) * 0.01

    # Pure-JAX reference of the expert forward pass.
    ref = jnp.maximum(x @ w1 + b1, 0.0) @ w2 + b2

    # 1) Resident-weight path (typical serving case: weights fit VMEM,
    #    grid = (2,) so the batch shards across both TCs on v7x).
    (out_res,) = expert_backend_forward(x, w1, b1, w2, b2)
    out_res = jax.block_until_ready(out_res)
    assert out_res.shape == (B, H)
    assert jnp.allclose(out_res, ref, atol=1e-3, rtol=1e-3)

    # 2) Streaming fallback path (forced here with small tiles so the test
    #    exercises both batch tiling and the F accumulation: grid = (2, 2)).
    (out_str,) = expert_backend_forward(x, w1, b1, w2, b2,
                                        block_m=16, block_f=256,
                                        force_streaming=True)
    out_str = jax.block_until_ready(out_str)
    assert jnp.allclose(out_str, ref, atol=1e-3, rtol=1e-3)

    # 3) bf16 serving dtypes (halves HBM weight traffic; recommended v6e/v7x).
    (out_bf16,) = expert_backend_forward(
        x.astype(jnp.bfloat16), w1.astype(jnp.bfloat16), b1.astype(jnp.bfloat16),
        w2.astype(jnp.bfloat16), b2.astype(jnp.bfloat16))
    out_bf16 = jax.block_until_ready(out_bf16)
    assert jnp.allclose(out_bf16.astype(jnp.float32), ref, atol=1e-1, rtol=1e-1)

    print("KERNEL_OK")
</pallas_src>

<mosaic_0001>
module attributes {stable_mosaic.version = 11 : i64} {
  func.func @ffn_resident_kernel(%arg0: i32, %arg1: memref<16x128xf32, #tpu.memory_space<vmem>>, %arg2: memref<128x512xf32, #tpu.memory_space<vmem>>, %arg3: memref<1x512xf32, #tpu.memory_space<vmem>>, %arg4: memref<512x128xf32, #tpu.memory_space<vmem>>, %arg5: memref<1x128xf32, #tpu.memory_space<vmem>>, %arg6: memref<16x128xf32, #tpu.memory_space<vmem>>) attributes {dimension_semantics = [#tpu.dimension_semantics<parallel>], iteration_bounds = array<i64: 2>, scalar_prefetch = 0 : i64, scratch_operands = 0 : i64, tpu.core_type = #tpu.core_type<tc>, window_params = [{transform_indices = @transform_0, window_bounds = array<i64: 16, 128>}, {pipeline_mode = #tpu.pipeline_mode<synchronous>, transform_indices = @transform_1, window_bounds = array<i64: 128, 512>}, {pipeline_mode = #tpu.pipeline_mode<synchronous>, transform_indices = @transform_2, window_bounds = array<i64: 1, 512>}, {pipeline_mode = #tpu.pipeline_mode<synchronous>, transform_indices = @transform_3, window_bounds = array<i64: 512, 128>}, {pipeline_mode = #tpu.pipeline_mode<synchronous>, transform_indices = @transform_4, window_bounds = array<i64: 1, 128>}, {transform_indices = @transform_5, window_bounds = array<i64: 16, 128>}]} {
    %c0 = arith.constant 0 : index
    %c0_0 = arith.constant 0 : index
    %0 = vector.load %arg1[%c0, %c0_0] : memref<16x128xf32, #tpu.memory_space<vmem>>, vector<16x128xf32>
    %c0_1 = arith.constant 0 : index
    %c0_2 = arith.constant 0 : index
    %1 = vector.load %arg2[%c0_1, %c0_2] : memref<128x512xf32, #tpu.memory_space<vmem>>, vector<128x512xf32>
    %cst = arith.constant dense<0.000000e+00> : vector<16x512xf32>
    %2 = tpu.matmul %0, %1, %cst {dimension_numbers = #tpu.dot_dimension_numbers<[1], [0], [0], [1], [0, 0, 1, 1], [], []>} : vector<16x128xf32>, vector<128x512xf32>, vector<16x512xf32> -> vector<16x512xf32>
    %c0_3 = arith.constant 0 : index
    %c0_4 = arith.constant 0 : index
    %3 = vector.load %arg3[%c0_3, %c0_4] : memref<1x512xf32, #tpu.memory_space<vmem>>, vector<1x512xf32>
    %4 = vector.broadcast %3 : vector<1x512xf32> to vector<16x512xf32>
    %5 = arith.addf %2, %4 : vector<16x512xf32>
    %cst_5 = arith.constant 0.000000e+00 : f32
    %6 = vector.broadcast %cst_5 : f32 to vector<16x512xf32>
    %7 = arith.maximumf %5, %6 : vector<16x512xf32>
    %c0_6 = arith.constant 0 : index
    %c0_7 = arith.constant 0 : index
    %8 = vector.load %arg4[%c0_6, %c0_7] : memref<512x128xf32, #tpu.memory_space<vmem>>, vector<512x128xf32>
    %cst_8 = arith.constant dense<0.000000e+00> : vector<16x128xf32>
    %9 = tpu.matmul %7, %8, %cst_8 {dimension_numbers = #tpu.dot_dimension_numbers<[1], [0], [0], [1], [0, 0, 1, 1], [], []>} : vector<16x512xf32>, vector<512x128xf32>, vector<16x128xf32> -> vector<16x128xf32>
    %c0_9 = arith.constant 0 : index
    %c0_10 = arith.constant 0 : index
    %10 = vector.load %arg5[%c0_9, %c0_10] : memref<1x128xf32, #tpu.memory_space<vmem>>, vector<1x128xf32>
    %11 = vector.broadcast %10 : vector<1x128xf32> to vector<16x128xf32>
    %12 = arith.addf %9, %11 : vector<16x128xf32>
    %c0_11 = arith.constant 0 : index
    %c0_12 = arith.constant 0 : index
    %13 = vector.load %arg6[%c0_11, %c0_12] : memref<16x128xf32, #tpu.memory_space<vmem>>, vector<16x128xf32>
    tpu.vector_store %arg6[%c0_11, %c0_12], %12 {strides = array<i32>} : memref<16x128xf32, #tpu.memory_space<vmem>>, vector<16x128xf32>,
    return
  }
  func.func @transform_0(%arg0: i32) -> (i32, i32) {
    %c0_i32 = arith.constant 0 : i32
    %c0_i32_0 = arith.constant 0 : i32
    return %arg0, %c0_i32 : i32, i32
  }
  func.func @transform_1(%arg0: i32) -> (i32, i32) {
    %c0_i32 = arith.constant 0 : i32
    %c0_i32_0 = arith.constant 0 : i32
    %c0_i32_1 = arith.constant 0 : i32
    return %c0_i32, %c0_i32_0 : i32, i32
  }
  func.func @transform_2(%arg0: i32) -> (i32, i32) {
    %c0_i32 = arith.constant 0 : i32
    %c0_i32_0 = arith.constant 0 : i32
    %c0_i32_1 = arith.constant 0 : i32
    return %c0_i32, %c0_i32_0 : i32, i32
  }
  func.func @transform_3(%arg0: i32) -> (i32, i32) {
    %c0_i32 = arith.constant 0 : i32
    %c0_i32_0 = arith.constant 0 : i32
    %c0_i32_1 = arith.constant 0 : i32
    return %c0_i32, %c0_i32_0 : i32, i32
  }
  func.func @transform_4(%arg0: i32) -> (i32, i32) {
    %c0_i32 = arith.constant 0 : i32
    %c0_i32_0 = arith.constant 0 : i32
    %c0_i32_1 = arith.constant 0 : i32
    return %c0_i32, %c0_i32_0 : i32, i32
  }
  func.func @transform_5(%arg0: i32) -> (i32, i32) {
    %c0_i32 = arith.constant 0 : i32
    %c0_i32_0 = arith.constant 0 : i32
    return %arg0, %c0_i32 : i32, i32
  }
}

module attributes {stable_mosaic.version = 11 : i64} {
  func.func @ffn_streaming_kernel(%arg0: i32, %arg1: i32, %arg2: memref<16x128xf32, #tpu.memory_space<vmem>>, %arg3: memref<128x512xf32, #tpu.memory_space<vmem>>, %arg4: memref<1x512xf32, #tpu.memory_space<vmem>>, %arg5: memref<512x128xf32, #tpu.memory_space<vmem>>, %arg6: memref<1x128xf32, #tpu.memory_space<vmem>>, %arg7: memref<16x128xf32, #tpu.memory_space<vmem>>, %arg8: memref<16x128xf32, #tpu.memory_space<vmem>>) attributes {dimension_semantics = [#tpu.dimension_semantics<parallel>, #tpu.dimension_semantics<arbitrary>], iteration_bounds = array<i64: 2, 1>, scalar_prefetch = 0 : i64, scratch_operands = 1 : i64, tpu.core_type = #tpu.core_type<tc>, window_params = [{transform_indices = @transform_0, window_bounds = array<i64: 16, 128>}, {transform_indices = @transform_1, window_bounds = array<i64: 128, 512>}, {transform_indices = @transform_2, window_bounds = array<i64: 1, 512>}, {transform_indices = @transform_3, window_bounds = array<i64: 512, 128>}, {pipeline_mode = #tpu.pipeline_mode<synchronous>, transform_indices = @transform_4, window_bounds = array<i64: 1, 128>}, {transform_indices = @transform_5, window_bounds = array<i64: 16, 128>}]} {
    %c0_i32 = arith.constant 0 : i32
    %0 = arith.cmpi eq, %arg1, %c0_i32 : i32
    %1 = arith.extui %0 : i1 to i32
    %c0_i32_0 = arith.constant 0 : i32
    %2 = arith.cmpi ne, %1, %c0_i32_0 : i32
    scf.if %2 {
      %c0_16 = arith.constant 0 : index
      %c0_17 = arith.constant 0 : index
      %19 = vector.load %arg6[%c0_16, %c0_17] : memref<1x128xf32, #tpu.memory_space<vmem>>, vector<1x128xf32>
      %20 = vector.shape_cast %19 : vector<1x128xf32> to vector<1x128xf32>
      %21 = vector.broadcast %20 : vector<1x128xf32> to vector<16x128xf32>
      %c0_18 = arith.constant 0 : index
      %c0_19 = arith.constant 0 : index
      %22 = vector.load %arg8[%c0_18, %c0_19] : memref<16x128xf32, #tpu.memory_space<vmem>>, vector<16x128xf32>
      tpu.vector_store %arg8[%c0_18, %c0_19], %21 {strides = array<i32>} : memref<16x128xf32, #tpu.memory_space<vmem>>, vector<16x128xf32>,
    } else {
    }
    %c0 = arith.constant 0 : index
    %c0_1 = arith.constant 0 : index
    %3 = vector.load %arg2[%c0, %c0_1] : memref<16x128xf32, #tpu.memory_space<vmem>>, vector<16x128xf32>
    %c0_2 = arith.constant 0 : index
    %c0_3 = arith.constant 0 : index
    %4 = vector.load %arg3[%c0_2, %c0_3] : memref<128x512xf32, #tpu.memory_space<vmem>>, vector<128x512xf32>
    %cst = arith.constant dense<0.000000e+00> : vector<16x512xf32>
    %5 = tpu.matmul %3, %4, %cst {dimension_numbers = #tpu.dot_dimension_numbers<[1], [0], [0], [1], [0, 0, 1, 1], [], []>} : vector<16x128xf32>, vector<128x512xf32>, vector<16x512xf32> -> vector<16x512xf32>
    %c0_4 = arith.constant 0 : index
    %c0_5 = arith.constant 0 : index
    %6 = vector.load %arg4[%c0_4, %c0_5] : memref<1x512xf32, #tpu.memory_space<vmem>>, vector<1x512xf32>
    %7 = vector.broadcast %6 : vector<1x512xf32> to vector<16x512xf32>
    %8 = arith.addf %5, %7 : vector<16x512xf32>
    %cst_6 = arith.constant 0.000000e+00 : f32
    %9 = vector.broadcast %cst_6 : f32 to vector<16x512xf32>
    %10 = arith.maximumf %8, %9 : vector<16x512xf32>
    %c0_7 = arith.constant 0 : index
    %c0_8 = arith.constant 0 : index
    %11 = vector.load %arg8[%c0_7, %c0_8] : memref<16x128xf32, #tpu.memory_space<vmem>>, vector<16x128xf32>
    %c0_9 = arith.constant 0 : index
    %c0_10 = arith.constant 0 : index
    %12 = vector.load %arg5[%c0_9, %c0_10] : memref<512x128xf32, #tpu.memory_space<vmem>>, vector<512x128xf32>
    %cst_11 = arith.constant dense<0.000000e+00> : vector<16x128xf32>
    %13 = tpu.matmul %10, %12, %cst_11 {dimension_numbers = #tpu.dot_dimension_numbers<[1], [0], [0], [1], [0, 0, 1, 1], [], []>} : vector<16x512xf32>, vector<512x128xf32>, vector<16x128xf32> -> vector<16x128xf32>
    %14 = arith.addf %11, %13 : vector<16x128xf32>
    %c0_12 = arith.constant 0 : index
    %c0_13 = arith.constant 0 : index
    %15 = vector.load %arg8[%c0_12, %c0_13] : memref<16x128xf32, #tpu.memory_space<vmem>>, vector<16x128xf32>
    tpu.vector_store %arg8[%c0_12, %c0_13], %14 {strides = array<i32>} : memref<16x128xf32, #tpu.memory_space<vmem>>, vector<16x128xf32>,
    %c0_i32_14 = arith.constant 0 : i32
    %16 = arith.cmpi eq, %arg1, %c0_i32_14 : i32
    %17 = arith.extui %16 : i1 to i32
    %c0_i32_15 = arith.constant 0 : i32
    %18 = arith.cmpi ne, %17, %c0_i32_15 : i32
    scf.if %18 {
      %c0_16 = arith.constant 0 : index
      %c0_17 = arith.constant 0 : index
      %19 = vector.load %arg8[%c0_16, %c0_17] : memref<16x128xf32, #tpu.memory_space<vmem>>, vector<16x128xf32>
      %c0_18 = arith.constant 0 : index
      %c0_19 = arith.constant 0 : index
      %20 = vector.load %arg7[%c0_18, %c0_19] : memref<16x128xf32, #tpu.memory_space<vmem>>, vector<16x128xf32>
      tpu.vector_store %arg7[%c0_18, %c0_19], %19 {strides = array<i32>} : memref<16x128xf32, #tpu.memory_space<vmem>>, vector<16x128xf32>,
    } else {
    }
    return
  }
  func.func @transform_0(%arg0: i32, %arg1: i32) -> (i32, i32) {
    %c0_i32 = arith.constant 0 : i32
    %c0_i32_0 = arith.constant 0 : i32
    return %arg0, %c0_i32 : i32, i32
  }
  func.func @transform_1(%arg0: i32, %arg1: i32) -> (i32, i32) {
    %c0_i32 = arith.constant 0 : i32
    %c0_i32_0 = arith.constant 0 : i32
    return %c0_i32, %arg1 : i32, i32
  }
  func.func @transform_2(%arg0: i32, %arg1: i32) -> (i32, i32) {
    %c0_i32 = arith.constant 0 : i32
    %c0_i32_0 = arith.constant 0 : i32
    return %c0_i32, %arg1 : i32, i32
  }
  func.func @transform_3(%arg0: i32, %arg1: i32) -> (i32, i32) {
    %c0_i32 = arith.constant 0 : i32
    %c0_i32_0 = arith.constant 0 : i32
    return %arg1, %c0_i32 : i32, i32
  }
  func.func @transform_4(%arg0: i32, %arg1: i32) -> (i32, i32) {
    %c0_i32 = arith.constant 0 : i32
    %c0_i32_0 = arith.constant 0 : i32
    %c0_i32_1 = arith.constant 0 : i32
    return %c0_i32, %c0_i32_0 : i32, i32
  }
  func.func @transform_5(%arg0: i32, %arg1: i32) -> (i32, i32) {
    %c0_i32 = arith.constant 0 : i32
    %c0_i32_0 = arith.constant 0 : i32
    return %arg0, %c0_i32 : i32, i32
  }
}

</mosaic_0001>

<bundles_post_ra>
// kernel: tpu_custom_call.1
= control target key start
LH: loop header
LB: loop body
LE: loop exit
PB: predicated region body
PF: predicated region fallthrough
CT: control target
= control target key end

     0   :  { %10 = vsyncpa [#allocation3], 0  ;;  %s1502_s0 = inlined_call_operand.hbm [shape: f32[32,128], index: 0, kind: input, shape index: {}]   ;;  %s1503_s1 = inlined_call_operand.hbm [shape: f32[128,512], index: 1, kind: input, shape index: {}]   ;;  %s1504_s2 = inlined_call_operand.hbm [shape: f32[1,512], index: 2, kind: input, shape index: {}]   ;;  %s1505_s3 = inlined_call_operand.hbm [shape: f32[512,128], index: 3, kind: input, shape index: {}]   ;;  %s1506_s4 = inlined_call_operand.vmem [shape: f32[1,128], index: 4, kind: input, shape index: {}]   ;;  %s1507_s5 = inlined_call_operand.hbm [shape: f32[32,128], index: 5, kind: output, shape index: {}]  }
   0x1   :  { %12 = vsyncpa [#allocation3 + $0x1], 0 }
   0x2   :  { %13 = vsyncpa [#allocation6], 0 }
   0x3   :  { %14 = vsyncpa [#allocation9], 0 }
   0x4   :  { %15 = vsyncpa [#allocation4], 0 }
   0x5   :  { %17 = vsyncpa [#allocation4 + $0x1], 0  ;;  %s1281_s18 = smov 0   ;;  %s1283_s19 = smov 0  }
   0x6   :  { %s1285_s20 = smov 0   ;;  %s1287_s21 = smov 0  }
   0x7 LB: > { %s1302_s22 = sadd.s32 4294967295, %s1237_s21   ;;  %s876_s23 = sadd.s32 4294967294, %s1237_s21   ;;  %s1237_s21 = sphi %s1287_s21, %s1533_s21   ;;  %s1233_s20 = sphi %s1285_s20, %s1532_s20   ;;  %s1229_s19 = sphi %s1283_s19, %s1531_s19   ;;  %s1225_s18 = sphi %s1281_s18, %s1530_s18  }
   0x8   : > { %p43_p0 = scmp.ne.s32.totalorder %s1229_s19, %s1225_s18  ;;  %p1508_p1 = scmp.eq.s32.totalorder %s1302_s22, 0 }
   0x9   : > { %p157_p3 = scmp.eq.s32.totalorder %s876_s23, 1  ;;  %p877_p5 = scmp.ge.s32.totalorder %s1237_s21, 1 }
   0xa   : > { %p1311_p4 = por %p1508_p1, %p43_p0  ;;  %p164_p7 = scmp.lt.s32.totalorder %s1237_s21, 3 }
   0xb   : > { %p1316_p6 = por %p157_p3, %p43_p0  ;;  %s1239_s27 = smov [#allocation5]  }
   0xc   : > { %s1513_s24 = scalar_select %p1311_p4, 1, 0 }
   0xd   : > { %s1514_s25 = scalar_select %p1316_p6, 1, 0 }
   0xe   : > { %p1321_p8 = pnand %p877_p5, %p164_p7  ;;  %s176_s28 = sshll.u32 %s1239_s27, 4  ;;  %s177_s28 = int_to_ptr.vmem [resolvable:$true] %s176_s28 }
   0xf   : > { %s1240_s30 = smov [#allocation7]   ;;  %s1241_s7 = smov [#allocation8]  }
  0x10   : > { %s1515_s26 = scalar_select %p1321_p8, 1, 0 }
  0x11   : > { %p991_p9 = pneg %p1321_p8  ;;  %s190_s6 = sshll.u32 %s1240_s30, 4  ;;  %s191_s6 = int_to_ptr.vmem [resolvable:$true] %s190_s6 }
  0x12   : > { %s200_s8 = sshll.u32 %s1241_s7, 4  ;;  %s1070_s9 = scalar_lea.vmem %s177_s28, 8192  ;;  %s201_s8 = int_to_ptr.vmem [resolvable:$true] %s200_s8 }
  0x13   : > { %p1330_p11 = pnand %p991_p9, %p1508_p1  ;;  %p1071_p13 = scmp.ne.s32.totalorder %s177_s28, %s1070_s9 }
  0x14   : > { %p1078_p5 = scmp.lt.s32.totalorder %s177_s28, %s177_s28  ;;  %p1079_p7 = scmp.lt.s32.totalorder %s1070_s9, %s1070_s9 }
  0x15   : > { %p1061_p12 = pneg %p1330_p11 }
  0x16   : > { %p1080_p9 = por %p1079_p7, %p1078_p5 }
  0x17   : > { %p1073_p0 = pnand %p1071_p13, %p1061_p12 }
  0x19   : > { %p1074_p3 = pneg %p1073_p0 }
  0x1b   : > { %p1081_p10 = pnand %p1080_p9, %p1074_p3 }
  0x1d   : > { %1084 = shalt.err (!%p1081_p10)
}
  0x1e   : > { %s1242_s10 = smov 512   ;;  %s1243_s11 = smov 32  }
  0x1f   : > { %994 = dma.hbm_to_vmem [thread:$0]  (!%p1330_p11), %s1503_s1, 8192, %s177_s28, [#allocation6], %s1242_s10, %s1242_s10, %s1243_s11  }
  0x20   : > { %s1096_s14 = scalar_lea.vmem %s191_s6, 64  ;;  %p1104_p2 = scmp.lt.s32.totalorder %s191_s6, %s191_s6 }
  0x21   : > { %p1097_p1 = scmp.ne.s32.totalorder %s191_s6, %s1096_s14  ;;  %p1105_p6 = scmp.lt.s32.totalorder %s1096_s14, %s1096_s14 }
  0x23   : > { %p1099_p13 = pnand %p1097_p1, %p1061_p12  ;;  %p1106_p5 = por %p1105_p6, %p1104_p2 }
  0x25   : > { %p1100_p0 = pneg %p1099_p13 }
  0x27   : > { %p1107_p3 = pnand %p1106_p5, %p1100_p0 }
  0x29   : > { %1110 = shalt.err (!%p1107_p3)
}
  0x2a   : > { %997 = dma.hbm_to_vmem [thread:$0]  (!%p1330_p11), %s1504_s2, 64, %s191_s6, [#allocation6]  }
  0x2b   : > { %s1122_s17 = scalar_lea.vmem %s201_s8, 8192  ;;  %p1130_p9 = scmp.lt.s32.totalorder %s201_s8, %s201_s8 }
  0x2c   : > { %p1123_p10 = scmp.ne.s32.totalorder %s201_s8, %s1122_s17  ;;  %p1131_p13 = scmp.lt.s32.totalorder %s1122_s17, %s1122_s17 }
  0x2e   : > { %p1125_p7 = pnand %p1123_p10, %p1061_p12  ;;  %p1132_p4 = por %p1131_p13, %p1130_p9 }
  0x30   : > { %p1126_p1 = pneg %p1125_p7 }
  0x32   : > { %p1133_p2 = pnand %p1132_p4, %p1126_p1 }
  0x34   : > { %1136 = shalt.err (!%p1133_p2)
}
  0x35   : > { %s1510_s23 = smov 128   ;;  %s1245_s27 = smov 8  }
  0x36   : > { %1000 = dma.hbm_to_vmem [thread:$0]  (!%p1330_p11), %s1505_s3, 8192, %s201_s8, [#allocation9], %s1510_s23, %s1510_s23, %s1245_s27  }
  0x37   : > { %s1364_s6 = sadd.s32 1, %s1237_s21   ;;  %s30_s9 = sadd.s32 1, %s1233_s20 }
  0x38   : > { %s27_s7 = ssub.s32 %s1237_s21, %s1364_s6  ;;  %p37_p6 = scmp.ne.s32.totalorder %s1233_s20, %s1229_s19 }
  0x39   : > { %p28_p4 = scmp.eq.s32.totalorder %s27_s7, 0  ;;  %p38_p12 = scmp.eq.s32.totalorder %s1237_s21, 0 }
  0x3a   : > { %p1012_p0 = scmp.lt.s32.totalorder %s1237_s21, 2  ;;  %p1517_p3 = scmp.eq.s32.totalorder %s1302_s22, 1 }
  0x3b   : > { %s1374_s10 = scalar_select %p28_p4, %s1233_s20, %s30_s9  }
  0x3c   : > { %p39_p5 = por %p38_p12, %p37_p6  ;;  %p1378_p10 = por %p1517_p3, %p37_p6 }
  0x3d   : > { %s217_s11 = sand.u32 1, %s1233_s20   ;;  %s897_s12 = sshll.u32 %s1237_s21, 8 }
  0x3e   : > { %s1518_s29 = scalar_select %p1378_p10, 1, 0 }
  0x3f   : > { %s882_s8 = sshll.u32 %s217_s11, 4  ;;  %s1387_s15 = scalar_lea.hbm %s1502_s0, %s897_s12 }
  0x40   : > { %s221_s16 = scalar_lea.vmem [#allocation2], %s882_s8  ;;  %p1389_p11 = pnand %p1012_p0, %p39_p5 }
  0x41   : > { %s228_s17 = sshll.u32 %s221_s16, 4  ;;  %s1395_s30 = scalar_lea.sflag [#allocation3], %s217_s11  ;;  %s1393_s17 = int_to_ptr.vmem [resolvable:$true] %s228_s17 }
  0x42   : > { %s1137_s7 = scalar_lea.hbm %s1387_s15, 256  ;;  %p1139_p1 = pneg %p1389_p11 }
  0x43   : > { %p1138_p7 = scmp.ne.s32.totalorder %s1387_s15, %s1137_s7  ;;  %s1142_s8 = scalar_lea.hbm %s1502_s0, 512 }
  0x44   : > { %p1143_p2 = scmp.lt.s32.totalorder %s1387_s15, %s1502_s0  ;;  %p1144_p4 = scmp.lt.s32.totalorder %s1142_s8, %s1137_s7 }
  0x45   : > { %p1140_p9 = pnand %p1139_p1, %p1138_p7 }
  0x46   : > { %p1145_p6 = por %p1144_p4, %p1143_p2 }
  0x47   : > { %p1141_p13 = pneg %p1140_p9 }
  0x49   : > { %p1146_p12 = pnand %p1145_p6, %p1141_p13 }
  0x4b   : > { %1149 = shalt.err (!%p1146_p12)
}
  0x4c   : > { %s1150_s11 = scalar_lea.vmem %s1393_s17, 256  ;;  %s1246_s16 = smov [#allocation2]  }
  0x4d   : > { %p1151_p0 = scmp.ne.s32.totalorder %s1393_s17, %s1150_s11  ;;  %s1155_s23 = sshll.u32 %s1246_s16, 4  ;;  %s1156_s23 = int_to_ptr.vmem [resolvable:$false] %s1155_s23 }
  0x4e   : > { %s1157_s9 = scalar_lea.vmem %s1156_s23, 512  ;;  %p1158_p7 = scmp.lt.s32.totalorder %s1393_s17, %s1156_s23 }
  0x4f   : > { %p1153_p5 = pnand %p1151_p0, %p1139_p1  ;;  %p1159_p9 = scmp.lt.s32.totalorder %s1157_s9, %s1150_s11 }
  0x51   : > { %p1154_p3 = pneg %p1153_p5  ;;  %p1160_p10 = por %p1159_p9, %p1158_p7 }
  0x53   : > { %p1161_p8 = pnand %p1160_p10, %p1154_p3 }
  0x55   : > { %1164 = shalt.err (!%p1161_p8)
}
  0x56   : > { %s1520_s7 = smov 128   ;;  %p1521_p1 = scmp.ne.s32.totalorder %s1515_s26, 0 }
  0x57   : > { %1004 = dma.hbm_to_vmem [thread:$0]  (!%p1389_p11), %s1387_s15, 256, %s1393_s17, %s1395_s30, %s1520_s7, %s1520_s7, %s1245_s27  }
  0x58   : > { %240 = sbr.rel (%p1521_p1) target bundleno = 553 (0x229), region = 40  ;;  %s1422_s12 = sand.u32 (!%p1521_p1), 1, %s1229_s19  }
  0x59   : > { %s886_s23 = sshll.u32 (!%p1521_p1), %s1422_s12, 4  ;;  %s243_s8 = scalar_lea.sflag (!%p1521_p1), [#allocation3], %s1422_s12 }
  0x5a   : > { %s1428_s28 = scalar_lea.vmem (!%p1521_p1), [#allocation2], %s886_s23  ;;  %p1522_p8 = scmp.ne.s32.totalorder (!%p1521_p1), %s1513_s24, 0 }
  0x5d   : > { %1208 = dma.done.wait (%p1522_p8), %s243_s8, 256  }
  0x5e   : > { %1210 = vsyncadd (%p1522_p8), %s243_s8, 4294967040  ;;  %p1523_p10 = scmp.eq.s32.totalorder %s1302_s22, 0 }
  0x60   : > { %1212 = dma.done.wait (%p1523_p10), [#allocation6], 8256   ;;  %p1524_p11 = pmov %p1523_p10 }
  0x61   : > { %p1525_p13 = pmov %p1523_p10 }
  0x62   : > { %1214 = vsyncadd (%p1524_p11), [#allocation6], 4294959040 }
  0x63   : > { %1216 = dma.done.wait (%p1525_p13), [#allocation9], 8192   ;;  %p1526_p2 = pmov %p1523_p10 }
  0x64   : > { %v1247_v0 = vmov 0.0   ;;  %v350_v1 = vld [vmem:[#allocation5 + $0x1e8] sm:$0xff]  ;;  %v352_v2 = vld [vmem:[#allocation5 + $0x1f8] sm:$0xff]  ;;  %v349_v3 = vld [vmem:[#allocation5 + $0x1e0] sm:$0xff]  ;;  %s284_s27 = scalar_lea.vmem [#allocation10], %s886_s23  ;;  %s898_s17 = sshll.u32 %s1302_s22, 8 }
  0x65   : > { %1218 = vsyncadd (%p1526_p2), [#allocation9], 4294959104  ;;  %439 = vmatprep.mubr.f32.mxu0 %v1247_v0  ;;  %516 = vmatprep.mubr.f32.mxu1 %v1247_v0  ;;  %v351_v4 = vld [vmem:[#allocation5 + $0x1f0] sm:$0xff]  ;;  %v346_v5 = vld [vmem:[#allocation5 + $0x1c8] sm:$0xff]  ;;  %s774_s15 = sshll.u32 %s284_s27, 4  ;;  %s1459_s14 = scalar_lea.hbm %s1507_s5, %s898_s17  ;;  %s1454_s15 = int_to_ptr.vmem [resolvable:$true] %s774_s15 }
  0x66   : > { %375 = vmatprep.subr.mxu0 %v350_v1  ;;  %452 = vmatprep.subr.mxu1 %v352_v2  ;;  %v348_v6 = vld [vmem:[#allocation5 + $0x1d8] sm:$0xff]  ;;  %v345_v7 = vld [vmem:[#allocation5 + $0x1c0] sm:$0xff]  ;;  %v347_v8 = vld [vmem:[#allocation5 + $0x1d0] sm:$0xff]  ;;  %s761_s11 = scalar_lea.sflag [#allocation4], %s1422_s12  ;;  %s1165_s16 = scalar_lea.vmem %s1454_s15, 256 }
  0x67   : > { %376 = vmatpush1.msra.mxu0 %v349_v3  ;;  %453 = vmatpush1.msra.mxu1 %v351_v4  ;;  %v342_v9 = vld [vmem:[#allocation5 + $0x1a8] sm:$0xff]  ;;  %v344_v10 = vld [vmem:[#allocation5 + $0x1b8] sm:$0xff]  ;;  %v341_v11 = vld [vmem:[#allocation5 + $0x1a0] sm:$0xff]  ;;  %p1166_p4 = scmp.ne.s32.totalorder %s1454_s15, %s1165_s16  ;;  %p1527_p6 = scmp.ne.s32.totalorder %s1518_s29, 0 }
  0x68   : > { %377 = vmatprep.subr.mxu0 %v346_v5  ;;  %454 = vmatprep.subr.mxu1 %v348_v6  ;;  %v343_v12 = vld [vmem:[#allocation5 + $0x1b0] sm:$0xff]  ;;  %v338_v13 = vld [vmem:[#allocation5 + $0x188] sm:$0xff]  ;;  %v340_v14 = vld [vmem:[#allocation5 + $0x198] sm:$0xff]  ;;  %s1248_s22 = smov [#allocation10]  }
  0x69   : > { %378 = vmatpush1.msra.mxu0 %v345_v7  ;;  %455 = vmatpush1.msra.mxu1 %v347_v8  ;;  %v337_v15 = vld [vmem:[#allocation5 + $0x180] sm:$0xff]  ;;  %v339_v16 = vld [vmem:[#allocation5 + $0x190] sm:$0xff]  ;;  %v334_v17 = vld [vmem:[#allocation5 + $0x168] sm:$0xff]  ;;  %p1167_p12 = pnand %p1166_p4, %p1527_p6  ;;  %s1169_s9 = sshll.u32 %s1248_s22, 4  ;;  %s1170_s9 = int_to_ptr.vmem [resolvable:$false] %s1169_s9 }
  0x6a   : > { %379 = vmatprep.subr.mxu0 %v342_v9  ;;  %456 = vmatprep.subr.mxu1 %v344_v10  ;;  %v336_v18 = vld [vmem:[#allocation5 + $0x178] sm:$0xff]  ;;  %v333_v19 = vld [vmem:[#allocation5 + $0x160] sm:$0xff]  ;;  %v335_v20 = vld [vmem:[#allocation5 + $0x170] sm:$0xff]  ;;  %s1171_s7 = scalar_lea.vmem %s1170_s9, 512  ;;  %p1172_p5 = scmp.lt.s32.totalorder %s1454_s15, %s1170_s9 }
  0x6b   : > { %380 = vmatpush1.msra.mxu0 %v341_v11  ;;  %457 = vmatpush1.msra.mxu1 %v343_v12  ;;  %v330_v21 = vld [vmem:[#allocation5 + $0x148] sm:$0xff]  ;;  %v332_v22 = vld [vmem:[#allocation5 + $0x158] sm:$0xff]  ;;  %v329_v23 = vld [vmem:[#allocation5 + $0x140] sm:$0xff]  ;;  %p1168_p0 = pneg %p1167_p12  ;;  %p1173_p3 = scmp.lt.s32.totalorder %s1171_s7, %s1165_s16 }
  0x6c   : > { %381 = vmatprep.subr.mxu0 %v338_v13  ;;  %458 = vmatprep.subr.mxu1 %v340_v14  ;;  %v331_v24 = vld [vmem:[#allocation5 + $0x150] sm:$0xff]  ;;  %v326_v25 = vld [vmem:[#allocation5 + $0x128] sm:$0xff]  ;;  %v328_v26 = vld [vmem:[#allocation5 + $0x138] sm:$0xff] }
  0x6d   : > { %382 = vmatpush1.msra.mxu0 %v337_v15  ;;  %459 = vmatpush1.msra.mxu1 %v339_v16  ;;  %v325_v27 = vld [vmem:[#allocation5 + $0x120] sm:$0xff]  ;;  %v327_v28 = vld [vmem:[#allocation5 + $0x130] sm:$0xff]  ;;  %v322_v29 = vld [vmem:[#allocation5 + $0x108] sm:$0xff]  ;;  %p1174_p7 = por %p1173_p3, %p1172_p5 }
  0x6e   : > { %383 = vmatprep.subr.mxu0 %v334_v17  ;;  %460 = vmatprep.subr.mxu1 %v336_v18  ;;  %v324_v30 = vld [vmem:[#allocation5 + $0x118] sm:$0xff]  ;;  %v321_v31 = vld [vmem:[#allocation5 + $0x100] sm:$0xff]  ;;  %v323_v32 = vld [vmem:[#allocation5 + $0x110] sm:$0xff] }
  0x6f   : > { %384 = vmatpush1.msra.mxu0 %v333_v19  ;;  %461 = vmatpush1.msra.mxu1 %v335_v20  ;;  %v318_v33 = vld [vmem:[#allocation5 + $0xe8] sm:$0xff]  ;;  %v320_v34 = vld [vmem:[#allocation5 + $0xf8] sm:$0xff]  ;;  %v317_v35 = vld [vmem:[#allocation5 + $0xe0] sm:$0xff]  ;;  %p1175_p9 = pnand %p1174_p7, %p1168_p0 }
  0x70   : > { %385 = vmatprep.subr.mxu0 %v330_v21  ;;  %462 = vmatprep.subr.mxu1 %v332_v22  ;;  %v319_v36 = vld [vmem:[#allocation5 + $0xf0] sm:$0xff]  ;;  %v314_v37 = vld [vmem:[#allocation5 + $0xc8] sm:$0xff]  ;;  %v316_v38 = vld [vmem:[#allocation5 + $0xd8] sm:$0xff] }
  0x71   : > { %386 = vmatpush1.msra.mxu0 %v329_v23  ;;  %463 = vmatpush1.msra.mxu1 %v331_v24  ;;  %v313_v39 = vld [vmem:[#allocation5 + $0xc0] sm:$0xff]  ;;  %v315_v40 = vld [vmem:[#allocation5 + $0xd0] sm:$0xff]  ;;  %v310_v41 = vld [vmem:[#allocation5 + $0xa8] sm:$0xff] }
  0x72   : > { %387 = vmatprep.subr.mxu0 %v326_v25  ;;  %464 = vmatprep.subr.mxu1 %v328_v26  ;;  %v312_v42 = vld [vmem:[#allocation5 + $0xb8] sm:$0xff]  ;;  %v309_v43 = vld [vmem:[#allocation5 + $0xa0] sm:$0xff]  ;;  %v311_v44 = vld [vmem:[#allocation5 + $0xb0] sm:$0xff] }
  0x73   : > { %388 = vmatpush1.msra.mxu0 %v325_v27  ;;  %465 = vmatpush1.msra.mxu1 %v327_v28  ;;  %v306_v45 = vld [vmem:[#allocation5 + $0x88] sm:$0xff]  ;;  %v308_v46 = vld [vmem:[#allocation5 + $0x98] sm:$0xff]  ;;  %v305_v47 = vld [vmem:[#allocation5 + $0x80] sm:$0xff] }
  0x74   : > { %389 = vmatprep.subr.mxu0 %v322_v29  ;;  %466 = vmatprep.subr.mxu1 %v324_v30  ;;  %v307_v48 = vld [vmem:[#allocation5 + $0x90] sm:$0xff]  ;;  %v302_v49 = vld [vmem:[#allocation5 + $0x68] sm:$0xff]  ;;  %v304_v50 = vld [vmem:[#allocation5 + $0x78] sm:$0xff] }
  0x75   : > { %390 = vmatpush1.msra.mxu0 %v321_v31  ;;  %467 = vmatpush1.msra.mxu1 %v323_v32  ;;  %v301_v51 = vld [vmem:[#allocation5 + $0x60] sm:$0xff]  ;;  %v303_v52 = vld [vmem:[#allocation5 + $0x70] sm:$0xff]  ;;  %v298_v53 = vld [vmem:[#allocation5 + $0x48] sm:$0xff] }
  0x76   : > { %391 = vmatprep.subr.mxu0 %v318_v33  ;;  %468 = vmatprep.subr.mxu1 %v320_v34  ;;  %v300_v54 = vld [vmem:[#allocation5 + $0x58] sm:$0xff]  ;;  %v297_v55 = vld [vmem:[#allocation5 + $0x40] sm:$0xff]  ;;  %v299_v56 = vld [vmem:[#allocation5 + $0x50] sm:$0xff] }
  0x77   : > { %392 = vmatpush1.msra.mxu0 %v317_v35  ;;  %469 = vmatpush1.msra.mxu1 %v319_v36  ;;  %v294_v57 = vld [vmem:[#allocation5 + $0x28] sm:$0xff]  ;;  %v296_v58 = vld [vmem:[#allocation5 + $0x38] sm:$0xff]  ;;  %v293_v59 = vld [vmem:[#allocation5 + $0x20] sm:$0xff] }
  0x78   : > { %393 = vmatprep.subr.mxu0 %v314_v37  ;;  %470 = vmatprep.subr.mxu1 %v316_v38  ;;  %v295_v60 = vld [vmem:[#allocation5 + $0x30] sm:$0xff]  ;;  %v290_v61 = vld [vmem:[#allocation5 + $0x8] sm:$0xff]  ;;  %v292_v62 = vld [vmem:[#allocation5 + $0x18] sm:$0xff] }
  0x79   : > { %394 = vmatpush1.msra.mxu0 %v313_v39  ;;  %471 = vmatpush1.msra.mxu1 %v315_v40  ;;  %v289_v63 = vld [vmem:[#allocation5] sm:$0xff]  ;;  %v291_v1 = vld [vmem:[#allocation5 + $0x10] sm:$0xff]  ;;  %v288_v7 = vld [vmem:[%s1428_s28 + $0x8] sm:$0xff] }
  0x7a   : > { %395 = vmatprep.subr.mxu0 %v310_v41  ;;  %472 = vmatprep.subr.mxu1 %v312_v42  ;;  %v287_v2 = vld [vmem:[%s1428_s28] sm:$0xff] }
  0x7b   : > { %396 = vmatpush1.msra.mxu0 %v309_v43  ;;  %473 = vmatpush1.msra.mxu1 %v311_v44  ;;  %v568_v3 = vld [vmem:[#allocation8 + $0xf8] sm:$0xff]  ;;  %v567_v8 = vld [vmem:[#allocation8 + $0xf0] sm:$0xff]  ;;  %v566_v12 = vld [vmem:[#allocation8 + $0xe8] sm:$0xff] }
  0x7c   : > { %397 = vmatprep.subr.mxu0 %v306_v45  ;;  %474 = vmatprep.subr.mxu1 %v308_v46  ;;  %v600_v4 = vld [vmem:[#allocation8 + $0x1f8] sm:$0xff]  ;;  %v599_v9 = vld [vmem:[#allocation8 + $0x1f0] sm:$0xff]  ;;  %v598_v13 = vld [vmem:[#allocation8 + $0x1e8] sm:$0xff] }
  0x7d   : > { %398 = vmatpush1.msra.mxu0 %v305_v47  ;;  %475 = vmatpush1.msra.mxu1 %v307_v48  ;;  %v552_v5 = vld [vmem:[#allocation8 + $0x78] sm:$0xff]  ;;  %v551_v10 = vld [vmem:[#allocation8 + $0x70] sm:$0xff]  ;;  %v550_v14 = vld [vmem:[#allocation8 + $0x68] sm:$0xff] }
  0x7e   : > { %399 = vmatprep.subr.mxu0 %v302_v49  ;;  %476 = vmatprep.subr.mxu1 %v304_v50  ;;  %v584_v6 = vld [vmem:[#allocation8 + $0x178] sm:$0xff]  ;;  %v583_v11 = vld [vmem:[#allocation8 + $0x170] sm:$0xff]  ;;  %v582_v15 = vld [vmem:[#allocation8 + $0x168] sm:$0xff] }
  0x7f   : > { %400 = vmatpush1.msra.mxu0 %v301_v51  ;;  %477 = vmatpush1.msra.mxu1 %v303_v52  ;;  %v597_v16 = vld [vmem:[#allocation8 + $0x1e0] sm:$0xff]  ;;  %v564_v19 = vld [vmem:[#allocation8 + $0xd8] sm:$0xff]  ;;  %v563_v23 = vld [vmem:[#allocation8 + $0xd0] sm:$0xff] }
  0x80   : > { %401 = vmatprep.subr.mxu0 %v298_v53  ;;  %478 = vmatprep.subr.mxu1 %v300_v54  ;;  %v549_v17 = vld [vmem:[#allocation8 + $0x60] sm:$0xff]  ;;  %v596_v20 = vld [vmem:[#allocation8 + $0x1d8] sm:$0xff]  ;;  %v595_v24 = vld [vmem:[#allocation8 + $0x1d0] sm:$0xff] }
  0x81   : > { %402 = vmatpush1.msra.mxu0 %v297_v55  ;;  %479 = vmatpush1.msra.mxu1 %v299_v56  ;;  %v581_v18 = vld [vmem:[#allocation8 + $0x160] sm:$0xff]  ;;  %v548_v21 = vld [vmem:[#allocation8 + $0x58] sm:$0xff]  ;;  %v547_v25 = vld [vmem:[#allocation8 + $0x50] sm:$0xff] }
  0x82   : > { %403 = vmatprep.subr.mxu0 %v294_v57  ;;  %480 = vmatprep.subr.mxu1 %v296_v58  ;;  %v580_v22 = vld [vmem:[#allocation8 + $0x158] sm:$0xff]  ;;  %v579_v26 = vld [vmem:[#allocation8 + $0x150] sm:$0xff]  ;;  %v562_v27 = vld [vmem:[#allocation8 + $0xc8] sm:$0xff] }
  0x83   : > { %404 = vmatpush1.msra.mxu0 %v293_v59  ;;  %481 = vmatpush1.msra.mxu1 %v295_v60  ;;  %v594_v28 = vld [vmem:[#allocation8 + $0x1c8] sm:$0xff]  ;;  %v561_v31 = vld [vmem:[#allocation8 + $0xc0] sm:$0xff]  ;;  %v560_v35 = vld [vmem:[#allocation8 + $0xb8] sm:$0xff] }
  0x84   : > { %405 = vmatprep.subr.mxu0 %v290_v61  ;;  %482 = vmatprep.subr.mxu1 %v292_v62  ;;  %v546_v29 = vld [vmem:[#allocation8 + $0x48] sm:$0xff]  ;;  %v593_v32 = vld [vmem:[#allocation8 + $0x1c0] sm:$0xff]  ;;  %v592_v36 = vld [vmem:[#allocation8 + $0x1b8] sm:$0xff] }
  0x85   : > { %406 = vmatpush1.msra.mxu0 %v289_v63  ;;  %483 = vmatpush1.msra.mxu1 %v291_v1  ;;  %v578_v30 = vld [vmem:[#allocation8 + $0x148] sm:$0xff]  ;;  %v545_v33 = vld [vmem:[#allocation8 + $0x40] sm:$0xff]  ;;  %v544_v37 = vld [vmem:[#allocation8 + $0x38] sm:$0xff] }
  0x86   : > { %440 = vmatmul.mubr.f32.vlgmr.msra.gmra.mxu0 %v287_v2  ;;  %517 = vmatmul.mubr.f32.vlgmr.msra.gmra.mxu1 %v287_v2  ;;  %v577_v34 = vld [vmem:[#allocation8 + $0x140] sm:$0xff]  ;;  %v576_v38 = vld [vmem:[#allocation8 + $0x138] sm:$0xff]  ;;  %v559_v39 = vld [vmem:[#allocation8 + $0xb0] sm:$0xff] }
  0x87   : > { %445 = vmatprep.mubr.f32.mxu0 %v1247_v0  ;;  %522 = vmatprep.mubr.f32.mxu1 %v1247_v0  ;;  %v565_v0 = vld [vmem:[#allocation8 + $0xe0] sm:$0xff]  ;;  %v591_v40 = vld [vmem:[#allocation8 + $0x1b0] sm:$0xff]  ;;  %v558_v43 = vld [vmem:[#allocation8 + $0xa8] sm:$0xff] }
  0x88   : > { %899 = vmatprep.subr.mxu0 %v568_v3  ;;  %937 = vmatprep.subr.mxu1 %v600_v4  ;;  %v543_v41 = vld [vmem:[#allocation8 + $0x30] sm:$0xff]  ;;  %v590_v44 = vld [vmem:[#allocation8 + $0x1a8] sm:$0xff]  ;;  %v557_v47 = vld [vmem:[#allocation8 + $0xa0] sm:$0xff]  ;;  %v355_v4 = vlaneseq }
  0x89   : > { %900 = vmatpush3.msra.mxu0 %v552_v5  ;;  %938 = vmatpush3.msra.mxu1 %v584_v6  ;;  %v575_v42 = vld [vmem:[#allocation8 + $0x130] sm:$0xff]  ;;  %v542_v45 = vld [vmem:[#allocation8 + $0x28] sm:$0xff]  ;;  %v589_v48 = vld [vmem:[#allocation8 + $0x1a0] sm:$0xff] }
  0x8a   : > { %446 = vmatmul.mubr.f32.gmra.mxu0 %v288_v7  ;;  %523 = vmatmul.mubr.f32.gmra.mxu1 %v288_v7  ;;  %v574_v46 = vld [vmem:[#allocation8 + $0x128] sm:$0xff]  ;;  %v541_v49 = vld [vmem:[#allocation8 + $0x20] sm:$0xff]  ;;  %v556_v51 = vld [vmem:[#allocation8 + $0x98] sm:$0xff]  ;;  %v356_v5 = vshrl.u32 %v355_v4, 7 }
  0x8b   : > { %901 = vmatprep.subr.mxu0 %v567_v8  ;;  %939 = vmatprep.subr.mxu1 %v599_v9  ;;  %v573_v50 = vld [vmem:[#allocation8 + $0x120] sm:$0xff]  ;;  %v588_v52 = vld [vmem:[#allocation8 + $0x198] sm:$0xff]  ;;  %v555_v55 = vld [vmem:[#allocation8 + $0x90] sm:$0xff] }
  0x8c   : > { %902 = vmatpush3.msra.mxu0 %v551_v10  ;;  %940 = vmatpush3.msra.mxu1 %v583_v11  ;;  %v540_v53 = vld [vmem:[#allocation8 + $0x18] sm:$0xff]  ;;  %v587_v56 = vld [vmem:[#allocation8 + $0x190] sm:$0xff]  ;;  %v554_v59 = vld [vmem:[#allocation8 + $0x88] sm:$0xff]  ;;  %v365_v6 = vsub.s32 2, %v356_v5  ;;  %v357_v7 = vsub.s32 0, %v356_v5  ;;  %v361_v9 = vsub.s32 1, %v356_v5 }
  0x8d   : > { %903 = vmatprep.subr.mxu0 %v566_v12  ;;  %941 = vmatprep.subr.mxu1 %v598_v13  ;;  %v572_v54 = vld [vmem:[#allocation8 + $0x118] sm:$0xff]  ;;  %v539_v57 = vld [vmem:[#allocation8 + $0x10] sm:$0xff]  ;;  %v586_v60 = vld [vmem:[#allocation8 + $0x188] sm:$0xff]  ;;  %v369_v10 = vsub.s32 3, %v356_v5 }
  0x8e   : > { %904 = vmatpush3.msra.mxu0 %v550_v14  ;;  %942 = vmatpush3.msra.mxu1 %v582_v15  ;;  %v571_v58 = vld [vmem:[#allocation8 + $0x110] sm:$0xff]  ;;  %v538_v61 = vld [vmem:[#allocation8 + $0x8] sm:$0xff]  ;;  %v553_v63 = vld [vmem:[#allocation8 + $0x80] sm:$0xff] }
  0x8f   : > { %905 = vmatprep.subr.mxu0 %v565_v0  ;;  %943 = vmatprep.subr.mxu1 %v597_v16  ;;  %v570_v62 = vld [vmem:[#allocation8 + $0x108] sm:$0xff]  ;;  %v585_v1 = vld [vmem:[#allocation8 + $0x180] sm:$0xff]  ;;  %v353_v8 = vld [vmem:[#allocation7] sm:$0xf] }
  0x90   : > { %906 = vmatpush3.msra.mxu0 %v549_v17  ;;  %944 = vmatpush3.msra.mxu1 %v581_v18  ;;  %v537_v2 = vld [vmem:[#allocation8] sm:$0xff]  ;;  %v366_v11 = vrot.slane %v353_v8, %v365_v6  ;;  %v358_v12 = vrot.slane %v353_v8, %v357_v7  ;;  %v362_v13 = vrot.slane %v353_v8, %v361_v9 }
  0x91   : > { %907 = vmatprep.subr.mxu0 %v564_v19  ;;  %945 = vmatprep.subr.mxu1 %v596_v20  ;;  %v569_v3 = vld [vmem:[#allocation8 + $0x100] sm:$0xff]  ;;  %v370_v14 = vrot.slane %v353_v8, %v369_v10 }
  0x92   : > { %908 = vmatpush3.msra.mxu0 %v548_v21  ;;  %946 = vmatpush3.msra.mxu1 %v580_v22 }
  0x93   : > { %909 = vmatprep.subr.mxu0 %v563_v23  ;;  %947 = vmatprep.subr.mxu1 %v595_v24 }
  0x94   : > { %910 = vmatpush3.msra.mxu0 %v547_v25  ;;  %948 = vmatpush3.msra.mxu1 %v579_v26 }
  0x95   : > { %911 = vmatprep.subr.mxu0 %v562_v27  ;;  %949 = vmatprep.subr.mxu1 %v594_v28 }
  0x96   : > { %912 = vmatpush3.msra.mxu0 %v546_v29  ;;  %950 = vmatpush3.msra.mxu1 %v578_v30 }
  0x97   : > { %913 = vmatprep.subr.mxu0 %v561_v31  ;;  %951 = vmatprep.subr.mxu1 %v593_v32 }
  0x98   : > { %914 = vmatpush3.msra.mxu0 %v545_v33  ;;  %952 = vmatpush3.msra.mxu1 %v577_v34 }
  0x99   : > { %915 = vmatprep.subr.mxu0 %v560_v35  ;;  %953 = vmatprep.subr.mxu1 %v592_v36 }
  0x9a   : > { %916 = vmatpush3.msra.mxu0 %v544_v37  ;;  %954 = vmatpush3.msra.mxu1 %v576_v38 }
  0x9b   : > { %917 = vmatprep.subr.mxu0 %v559_v39  ;;  %955 = vmatprep.subr.mxu1 %v591_v40  ;;  %v891_v40 = vld [vmem:[%s1506_s4] ss:$0 sm:$0xff] }
  0x9c   : > { %918 = vmatpush3.msra.mxu0 %v543_v41  ;;  %956 = vmatpush3.msra.mxu1 %v575_v42 }
  0x9d   : > { %919 = vmatprep.subr.mxu0 %v558_v43  ;;  %957 = vmatprep.subr.mxu1 %v590_v44 }
  0x9e   : > { %920 = vmatpush3.msra.mxu0 %v542_v45  ;;  %958 = vmatpush3.msra.mxu1 %v574_v46 }
  0x9f   : > { %921 = vmatprep.subr.mxu0 %v557_v47  ;;  %959 = vmatprep.subr.mxu1 %v589_v48 }
  0xa0   : > { %922 = vmatpush3.msra.mxu0 %v541_v49  ;;  %960 = vmatpush3.msra.mxu1 %v573_v50 }
  0xa1   : > { %923 = vmatprep.subr.mxu0 %v556_v51  ;;  %961 = vmatprep.subr.mxu1 %v588_v52 }
  0xa2   : > { %924 = vmatpush3.msra.mxu0 %v540_v53  ;;  %962 = vmatpush3.msra.mxu1 %v572_v54 }
  0xa3   : > { %925 = vmatprep.subr.mxu0 %v555_v55  ;;  %963 = vmatprep.subr.mxu1 %v587_v56 }
  0xa4   : > { %926 = vmatpush3.msra.mxu0 %v539_v57  ;;  %964 = vmatpush3.msra.mxu1 %v571_v58 }
  0xa5   : > { %927 = vmatprep.subr.mxu0 %v554_v59  ;;  %965 = vmatprep.subr.mxu1 %v586_v60 }
  0xa6   : > { %928 = vmatpush3.msra.mxu0 %v538_v61  ;;  %966 = vmatpush3.msra.mxu1 %v570_v62 }
  0xa7   : > { %929 = vmatprep.subr.mxu0 %v553_v63  ;;  %967 = vmatprep.subr.mxu1 %v585_v1 }
  0xa8   : > { %930 = vmatpush3.msra.mxu0 %v537_v2  ;;  %968 = vmatpush3.msra.mxu1 %v569_v3 }
 0x146   : > { %v441_v15 = vpop.f32.mrf.mxu0  ;;  %v518_v0 = vpop.f32.mrf.mxu1 }
 0x147   : > { %v519_v16 = vadd.f32 %v518_v0, %v366_v11  ;;  %v442_v17 = vadd.f32 %v441_v15, %v358_v12 }
 0x148   : > { %v443_v18 = vpop.f32.mrf.mxu0  ;;  %v520_v19 = vpop.f32.mrf.mxu1 }
 0x149   : > { %v444_v20 = vadd.f32 %v443_v18, %v362_v13  ;;  %v521_v21 = vadd.f32 %v520_v19, %v370_v14  ;;  %v531_v22 = vmax.f32 %v519_v16, 0.0  ;;  %v529_v28 = vmax.f32 %v442_v17, 0.0 }
 0x14a   : > { %v447_v23 = vpop.f32.mrf.mxu0  ;;  %v524_v24 = vpop.f32.mrf.mxu1 }
 0x14b   : > { %v530_v25 = vmax.f32 %v444_v20, 0.0  ;;  %v532_v26 = vmax.f32 %v521_v21, 0.0  ;;  %v525_v27 = vadd.f32 %v524_v24, %v366_v11  ;;  %v448_v29 = vadd.f32 %v447_v23, %v358_v12 }
 0x14c   : > { %v449_v30 = vpop.f32.mrf.mxu0  ;;  %v526_v31 = vpop.f32.mrf.mxu1 }
 0x14d   : > { %v450_v32 = vadd.f32 %v449_v30, %v362_v13  ;;  %v527_v33 = vadd.f32 %v526_v31, %v370_v14  ;;  %672 = vmatprep.mubr.f32.mxu0 %v530_v25  ;;  %747 = vmatprep.mubr.f32.mxu1 %v532_v26  ;;  %v535_v34 = vmax.f32 %v525_v27, 0.0  ;;  %v533_v37 = vmax.f32 %v448_v29, 0.0 }
 0x14e   : > { %673 = vmatmul.mubr.f32.vlgmr.msra.gmra.mxu0 %v529_v28  ;;  %748 = vmatmul.mubr.f32.vlgmr.msra.gmra.mxu1 %v531_v22 }
 0x14f   : > { %v534_v35 = vmax.f32 %v450_v32, 0.0  ;;  %v536_v36 = vmax.f32 %v527_v33, 0.0 }
 0x151   : > { %677 = vmatprep.mubr.f32.mxu0 %v534_v35  ;;  %752 = vmatprep.mubr.f32.mxu1 %v536_v36 }
 0x152   : > { %678 = vmatmul.mubr.f32.gmra.mxu0 %v533_v37  ;;  %753 = vmatmul.mubr.f32.gmra.mxu1 %v535_v34 }
 0x20e   : > { %v931_v38 = vpop.f32.mrf.mxu0  ;;  %v969_v39 = vpop.f32.mrf.mxu1 }
 0x210   : > { %v932_v41 = vpop.f32.mrf.mxu0  ;;  %v970_v42 = vpop.f32.mrf.mxu1 }
 0x211   : > { %v933_v43 = vadd.f32 %v932_v41, %v931_v38  ;;  %v971_v47 = vadd.f32 %v970_v42, %v969_v39 }
 0x212   : > { %v934_v44 = vpop.f32.mrf.mxu0  ;;  %v972_v45 = vpop.f32.mrf.mxu1 }
 0x213   : > { %v675_v46 = vadd.f32 %v933_v43, %v891_v40 }
 0x214   : > { %v935_v48 = vpop.f32.mrf.mxu0  ;;  %v973_v49 = vpop.f32.mrf.mxu1 }
 0x215   : > { %v750_v50 = vadd.f32 %v971_v47, %v675_v46  ;;  %v936_v51 = vadd.f32 %v935_v48, %v934_v44  ;;  %v974_v53 = vadd.f32 %v973_v49, %v972_v45 }
 0x217   : > { %758 = vst [vmem:[%s284_s27] sm:$0xff] %v750_v50  ;;  %v680_v52 = vadd.f32 %v936_v51, %v891_v40 }
 0x219   : > { %v755_v54 = vadd.f32 %v974_v53, %v680_v52 }
 0x21b   : > { %759 = vst [vmem:[%s284_s27 + $0x8] sm:$0xff] %v755_v54 }
 0x21c   : > { %1178 = shalt.err (!%p1175_p9)
}
 0x21d   : > { %s1179_s23 = scalar_lea.hbm %s1459_s14, 256  ;;  %s1183_s24 = scalar_lea.hbm %s1507_s5, 512 }
 0x21e   : > { %p1180_p1 = scmp.ne.s32.totalorder %s1459_s14, %s1179_s23  ;;  %p1184_p11 = scmp.lt.s32.totalorder %s1459_s14, %s1507_s5 }
 0x21f   : > { %p1185_p13 = scmp.lt.s32.totalorder %s1183_s24, %s1179_s23 }
 0x220   : > { %p1181_p8 = pnand %p1180_p1, %p1527_p6 }
 0x221   : > { %p1186_p2 = por %p1185_p13, %p1184_p11 }
 0x222   : > { %p1182_p10 = pneg %p1181_p8 }
 0x224   : > { %p1187_p4 = pnand %p1186_p2, %p1182_p10 }
 0x226   : > { %1190 = shalt.err (!%p1187_p4)
}
 0x227   : > { %s1249_s17 = smov 128   ;;  %s1250_s30 = smov 8  }
 0x228   : > { %989 = dma.vmem_to_hbm [thread:$0]  (%p1527_p6), %s1454_s15, 256, %s1459_s14, %s761_s11, %s1249_s17, %s1249_s17, %s1250_s30  }
 0x229 PF: > { %s789_s13 = sand.u32 1, %s1225_s18   ;;  %p1528_p12 = scmp.ne.s32.totalorder %s1514_s25, 0 }
 0x22a   : > { %p1529_p0 = scmp.ge.s32.totalorder %s1237_s21, 2  ;;  %s790_s16 = scalar_lea.sflag [#allocation4], %s789_s13 }
 0x22c   : > { %p1006_p5 = pnand %p1529_p0, %p1528_p12 }
 0x22e   : > { %p1007_p3 = pneg %p1006_p5 }
 0x230   : > { %1220 = dma.done.wait (%p1007_p3), %s790_s16, 256  }
 0x231   : > { %1222 = vsyncadd (%p1007_p3), %s790_s16, 4294967040  ;;  %p20_p7 = scmp.ge.s32.totalorder %s1364_s6, 4   ;;  %s1530_s18 = smov %s1229_s19 }
 0x232   : > { %s1531_s19 = smov %s1233_s20  ;;  %s1532_s20 = smov %s1374_s10 }
 0x233   : > { %s1533_s21 = smov %s1364_s6  ;;  %22 = sbr.rel (!%p20_p7) target bundleno = 7 (0x7), region = 97 }
 0x238   :  { %795 = vsyncpa [#allocation3], 1 }
 0x239   :  { %797 = vsyncpa [#allocation3 + $0x1], 1 }
 0x23a   :  { %798 = vsyncpa [#allocation6], 1 }
 0x23b   :  { %799 = vsyncpa [#allocation9], 1 }
 0x23c   :  { %800 = vsyncpa [#allocation4], 1 }
 0x23d   :  { %802 = vsyncpa [#allocation4 + $0x1], 1 }

// kernel: tpu_custom_call.1
= control target key start
LH: loop header
LB: loop body
LE: loop exit
PB: predicated region body
PF: predicated region fallthrough
CT: control target
= control target key end

     0   :  { %s1605_s0 = inlined_call_operand.hbm [shape: f32[32,128], index: 0, kind: input, shape index: {}]   ;;  %s1606_s1 = inlined_call_operand.hbm [shape: f32[128,512], index: 1, kind: input, shape index: {}]   ;;  %s1607_s2 = inlined_call_operand.hbm [shape: f32[1,512], index: 2, kind: input, shape index: {}]   ;;  %s1608_s3 = inlined_call_operand.hbm [shape: f32[512,128], index: 3, kind: input, shape index: {}]   ;;  %s1609_s4 = inlined_call_operand.vmem [shape: f32[1,128], index: 4, kind: input, shape index: {}]   ;;  %s1610_s5 = inlined_call_operand.hbm [shape: f32[32,128], index: 5, kind: output, shape index: {}]  }
   0x1   :  { %1617 = sst [smem:[#allocation16_spill]] %s1606_s1 }
   0x2   :  { %10 = vsyncpa [#allocation4], 0 }
   0x3   :  { %12 = vsyncpa [#allocation4 + $0x1], 0 }
   0x4   :  { %13 = vsyncpa [#allocation7], 0 }
   0x5   :  { %14 = vsyncpa [#allocation10], 0 }
   0x6   :  { %15 = vsyncpa [#allocation5], 0 }
   0x7   :  { %17 = vsyncpa [#allocation5 + $0x1], 0  ;;  %s1384_s18 = smov 0   ;;  %s1386_s19 = smov 0  }
   0x8   :  { %s1388_s20 = smov 0   ;;  %s1390_s21 = smov 0  }
   0x9   :  { %s1392_s22 = smov 0   ;;  %s1394_s23 = smov 0  }
   0xa LB: > { %s946_s24 = sadd.s32 4294967295, %s1340_s23   ;;  %s947_s25 = sadd.s32 4294967294, %s1340_s23   ;;  %s1340_s23 = sphi %s1394_s23, %s23_s23   ;;  %s1336_s22 = sphi %s1392_s22, %s1638_s22   ;;  %s1332_s21 = sphi %s1390_s21, %s1637_s21   ;;  %s1328_s20 = sphi %s1388_s20, %s1636_s20   ;;  %s1324_s19 = sphi %s1386_s19, %s1635_s19   ;;  %s1320_s18 = sphi %s1384_s18, %s1634_s18  }
   0xb   : > { %p55_p0 = scmp.ne.s32.totalorder %s1324_s19, %s1320_s18  ;;  %p1418_p1 = scmp.eq.s32.totalorder %s946_s24, 0 }
   0xc   : > { %p1422_p2 = scmp.eq.s32.totalorder %s946_s24, 1  ;;  %p184_p3 = scmp.eq.s32.totalorder %s947_s25, 1 }
   0xd   : > { %s1618_s26 = scalar_select %p1418_p1, 1, 0 }
   0xe   : > { %p1428_p4 = por %p1418_p1, %p55_p0  ;;  %p948_p5 = scmp.ge.s32.totalorder %s1340_s23, 1 }
   0xf   : > { %p1433_p6 = por %p184_p3, %p55_p0  ;;  %p191_p7 = scmp.lt.s32.totalorder %s1340_s23, 3 }
  0x10   : > { %s1620_s28 = scalar_select %p1428_p4, 1, 0 }
  0x11   : > { %s1621_s29 = scalar_select %p1433_p6, 1, 0 }
  0x12   : > { %p1438_p8 = pnand %p948_p5, %p191_p7  ;;  %s1342_s6 = smov [#allocation6]  }
  0x13   : > { %s206_s7 = sshll.u32 %s1342_s6, 4  ;;  %s1343_s9 = smov [#allocation8]   ;;  %s207_s7 = int_to_ptr.vmem [resolvable:$true] %s206_s7 }
  0x14   : > { %s1622_s30 = scalar_select %p1438_p8, 1, 0 }
  0x15   : > { %p1062_p9 = pneg %p1438_p8  ;;  %s223_s10 = sshll.u32 %s1343_s9, 4  ;;  %s224_s10 = int_to_ptr.vmem [resolvable:$true] %s223_s10 }
  0x16   : > { %s1344_s11 = smov [#allocation9]   ;;  %s1157_s13 = scalar_lea.vmem %s207_s7, 8192 }
  0x17   : > { %p1447_p11 = pnand %p1062_p9, %p1418_p1  ;;  %s236_s12 = sshll.u32 %s1344_s11, 4  ;;  %s237_s12 = int_to_ptr.vmem [resolvable:$true] %s236_s12 }
  0x18   : > { %p1158_p13 = scmp.ne.s32.totalorder %s207_s7, %s1157_s13  ;;  %p1165_p5 = scmp.lt.s32.totalorder %s207_s7, %s207_s7 }
  0x19   : > { %p1148_p12 = pneg %p1447_p11  ;;  %p1166_p7 = scmp.lt.s32.totalorder %s1157_s13, %s1157_s13 }
  0x1b   : > { %p1160_p0 = pnand %p1158_p13, %p1148_p12  ;;  %p1167_p9 = por %p1166_p7, %p1165_p5 }
  0x1d   : > { %p1161_p3 = pneg %p1160_p0 }
  0x1f   : > { %p1168_p10 = pnand %p1167_p9, %p1161_p3 }
  0x21   : > { %1171 = shalt.err (!%p1168_p10)
}
  0x22   : > { %s1345_s14 = smov 512   ;;  %s1346_s15 = smov 32  }
  0x23   : > { %s1624_s1 = sld [smem:[#allocation16_spill]]  ;;  %s1183_s24 = scalar_lea.vmem %s224_s10, 64 }
  0x24   : > { %p1184_p6 = scmp.ne.s32.totalorder %s224_s10, %s1183_s24  ;;  %p1191_p1 = scmp.lt.s32.totalorder %s224_s10, %s224_s10 }
  0x25   : > { %p1192_p4 = scmp.lt.s32.totalorder %s1183_s24, %s1183_s24 }
  0x26   : > { %p1186_p13 = pnand %p1184_p6, %p1148_p12 }
  0x27   : > { %p1193_p5 = por %p1192_p4, %p1191_p1 }
  0x28   : > { %p1187_p0 = pneg %p1186_p13 }
  0x29   : > { %1065 = dma.hbm_to_vmem [thread:$0]  (!%p1447_p11), %s1624_s1, 8192, %s207_s7, [#allocation7], %s1345_s14, %s1345_s14, %s1346_s15  }
  0x2a   : > { %p1194_p3 = pnand %p1193_p5, %p1187_p0 }
  0x2c   : > { %1197 = shalt.err (!%p1194_p3)
}
  0x2d   : > { %1068 = dma.hbm_to_vmem [thread:$0]  (!%p1447_p11), %s1607_s2, 64, %s224_s10, [#allocation7]  }
  0x2e   : > { %s1209_s7 = scalar_lea.vmem %s237_s12, 8192  ;;  %p1217_p9 = scmp.lt.s32.totalorder %s237_s12, %s237_s12 }
  0x2f   : > { %p1210_p10 = scmp.ne.s32.totalorder %s237_s12, %s1209_s7  ;;  %p1218_p13 = scmp.lt.s32.totalorder %s1209_s7, %s1209_s7 }
  0x31   : > { %p1212_p7 = pnand %p1210_p10, %p1148_p12  ;;  %p1219_p8 = por %p1218_p13, %p1217_p9 }
  0x33   : > { %p1213_p6 = pneg %p1212_p7 }
  0x35   : > { %p1220_p1 = pnand %p1219_p8, %p1213_p6 }
  0x37   : > { %1223 = shalt.err (!%p1220_p1)
}
  0x38   : > { %s1615_s9 = smov 128   ;;  %s1616_s10 = smov 8  }
  0x39   : > { %1071 = dma.hbm_to_vmem [thread:$0]  (!%p1447_p11), %s1608_s3, 8192, %s237_s12, [#allocation10], %s1615_s9, %s1615_s9, %s1616_s10  }
  0x3a   : > { %s42_s14 = sadd.s32 1, %s1328_s20  ;;  %s35_s15 = sadd.s32 1, %s1336_s22 }
  0x3b   : > { %p49_p4 = scmp.ne.s32.totalorder %s1328_s20, %s1324_s19  ;;  %p37_p8 = scmp.ge.s32.totalorder %s35_s15, 2 }
  0x3c   : > { %p50_p12 = scmp.eq.s32.totalorder %s1340_s23, 0  ;;  %p1083_p5 = scmp.lt.s32.totalorder %s1340_s23, 2 }
  0x3d   : > { %p1487_p0 = por %p1422_p2, %p49_p4  ;;  %s1640_s15 = smov (%p37_p8, %s35_s15), 0 }
  0x3e   : > { %p51_p3 = por %p50_p12, %p49_p4  ;;  %s253_s8 = sand.u32 1, %s1328_s20  }
  0x3f   : > { %s39_s17 = ssub.s32 %s1336_s22, %s1640_s15  ;;  %s953_s12 = sshll.u32 %s253_s8, 4 }
  0x40   : > { %p40_p10 = scmp.eq.s32.totalorder %s39_s17, 0  ;;  %s968_s24 = sshll.u32 %s1336_s22, 8 }
  0x41   : > { %s263_s27 = scalar_lea.hbm %s1605_s0, %s968_s24  ;;  %s257_s11 = scalar_lea.vmem [#allocation3], %s953_s12 }
  0x42   : > { %s1499_s25 = scalar_select %p40_p10, %s1328_s20, %s42_s14  }
  0x43   : > { %s264_s13 = sshll.u32 %s257_s11, 4  ;;  %p1506_p2 = pnand %p1083_p5, %p51_p3  ;;  %s265_s13 = int_to_ptr.vmem [resolvable:$true] %s264_s13 }
  0x44   : > { %s254_s10 = scalar_lea.sflag [#allocation4], %s253_s8  ;;  %s1237_s17 = scalar_lea.vmem %s265_s13, 256 }
  0x45   : > { %p1226_p11 = pneg %p1506_p2  ;;  %p1238_p7 = scmp.ne.s32.totalorder %s265_s13, %s1237_s17 }
  0x46   : > { %s1349_s14 = smov [#allocation3]  }
  0x47   : > { %p1240_p6 = pnand %p1238_p7, %p1226_p11  ;;  %s1242_s1 = sshll.u32 %s1349_s14, 4  ;;  %s1243_s1 = int_to_ptr.vmem [resolvable:$false] %s1242_s1 }
  0x48   : > { %s1244_s24 = scalar_lea.vmem %s1243_s1, 512  ;;  %p1245_p13 = scmp.lt.s32.totalorder %s265_s13, %s1243_s1 }
  0x49   : > { %p1241_p9 = pneg %p1240_p6  ;;  %p1246_p1 = scmp.lt.s32.totalorder %s1244_s24, %s1237_s17 }
  0x4b   : > { %p1247_p4 = por %p1246_p1, %p1245_p13 }
  0x4d   : > { %p1248_p8 = pnand %p1247_p4, %p1241_p9 }
  0x4f   : > { %1251 = shalt.err (!%p1248_p8)
}
  0x50   : > { %s1627_s12 = smov 8   ;;  %s1628_s6 = smov 128  }
  0x51   : > { %1075 = dma.hbm_to_vmem [thread:$0]  (!%p1506_p2), %s263_s27, 256, %s265_s13, %s254_s10, %s1628_s6, %s1628_s6, %s1627_s12  }
  0x52   : > { %p1629_p12 = scmp.ne.s32.totalorder %s1622_s30, 0 }
  0x53   : > { %s1520_s8 = sand.u32 (!%p1629_p12), 1, %s1324_s19   ;;  %p1630_p5 = scmp.ne.s32.totalorder (!%p1629_p12), %s1620_s28, 0 }
  0x54   : > { %276 = sbr.rel (%p1629_p12) target bundleno = 548 (0x224), region = 40  ;;  %s957_s1 = sshll.u32 (!%p1629_p12), %s1520_s8, 4 }
  0x55   : > { %s279_s7 = scalar_lea.sflag (!%p1629_p12), [#allocation4], %s1520_s8  ;;  %s1526_s11 = scalar_lea.vmem (!%p1629_p12), [#allocation3], %s957_s1 }
  0x59   : > { %1303 = dma.done.wait (%p1630_p5), %s279_s7, 256  }
  0x5a   : > { %1305 = vsyncadd (%p1630_p5), %s279_s7, 4294967040  ;;  %p1631_p3 = scmp.ne.s32.totalorder %s1618_s26, 0 }
  0x5c   : > { %1307 = dma.done.wait (%p1631_p3), [#allocation7], 8256  }
  0x5d   : > { %1309 = vsyncadd (%p1631_p3), [#allocation7], 4294959040 }
  0x5e   : > { %1311 = dma.done.wait (%p1631_p3), [#allocation10], 8192  }
  0x5f   : > { %1313 = vsyncadd (%p1631_p3), [#allocation10], 4294959104  ;;  %v1350_v0 = vmov 0.0   ;;  %v402_v1 = vld [vmem:[#allocation6 + $0x1e8] sm:$0xff]  ;;  %v404_v2 = vld [vmem:[#allocation6 + $0x1f8] sm:$0xff]  ;;  %s320_s30 = scalar_lea.vmem [#allocation11], %s957_s1 }
  0x60   : > { %491 = vmatprep.mubr.f32.mxu0 %v1350_v0  ;;  %568 = vmatprep.mubr.f32.mxu1 %v1350_v0  ;;  %v401_v3 = vld [vmem:[#allocation6 + $0x1e0] sm:$0xff]  ;;  %v403_v4 = vld [vmem:[#allocation6 + $0x1f0] sm:$0xff]  ;;  %v398_v5 = vld [vmem:[#allocation6 + $0x1c8] sm:$0xff]  ;;  %s830_s9 = sshll.u32 %s320_s30, 4  ;;  %s969_s10 = sshll.u32 %s1332_s21, 8  ;;  %s1552_s9 = int_to_ptr.vmem [resolvable:$true] %s830_s9 }
  0x61   : > { %427 = vmatprep.subr.mxu0 %v402_v1  ;;  %504 = vmatprep.subr.mxu1 %v404_v2  ;;  %v400_v6 = vld [vmem:[#allocation6 + $0x1d8] sm:$0xff]  ;;  %v397_v7 = vld [vmem:[#allocation6 + $0x1c0] sm:$0xff]  ;;  %v399_v8 = vld [vmem:[#allocation6 + $0x1d0] sm:$0xff]  ;;  %s1557_s17 = scalar_lea.hbm %s1610_s5, %s969_s10  ;;  %s817_s14 = scalar_lea.sflag [#allocation5], %s1520_s8 }
  0x62   : > { %428 = vmatpush1.msra.mxu0 %v401_v3  ;;  %505 = vmatpush1.msra.mxu1 %v403_v4  ;;  %v394_v9 = vld [vmem:[#allocation6 + $0x1a8] sm:$0xff]  ;;  %v396_v10 = vld [vmem:[#allocation6 + $0x1b8] sm:$0xff]  ;;  %v393_v11 = vld [vmem:[#allocation6 + $0x1a0] sm:$0xff]  ;;  %s1252_s24 = scalar_lea.vmem %s1552_s9, 256  ;;  %s1351_s21 = smov [#allocation11]  }
  0x63   : > { %429 = vmatprep.subr.mxu0 %v398_v5  ;;  %506 = vmatprep.subr.mxu1 %v400_v6  ;;  %v395_v12 = vld [vmem:[#allocation6 + $0x1b0] sm:$0xff]  ;;  %v390_v13 = vld [vmem:[#allocation6 + $0x188] sm:$0xff]  ;;  %v392_v14 = vld [vmem:[#allocation6 + $0x198] sm:$0xff]  ;;  %p1253_p10 = scmp.ne.s32.totalorder %s1552_s9, %s1252_s24  ;;  %s1256_s12 = sshll.u32 %s1351_s21, 4  ;;  %s1257_s12 = int_to_ptr.vmem [resolvable:$false] %s1256_s12 }
  0x64   : > { %430 = vmatpush1.msra.mxu0 %v397_v7  ;;  %507 = vmatpush1.msra.mxu1 %v399_v8  ;;  %v389_v15 = vld [vmem:[#allocation6 + $0x180] sm:$0xff]  ;;  %v391_v16 = vld [vmem:[#allocation6 + $0x190] sm:$0xff]  ;;  %v386_v17 = vld [vmem:[#allocation6 + $0x168] sm:$0xff]  ;;  %s1258_s6 = scalar_lea.vmem %s1257_s12, 512  ;;  %p1259_p7 = scmp.lt.s32.totalorder %s1552_s9, %s1257_s12 }
  0x65   : > { %431 = vmatprep.subr.mxu0 %v394_v9  ;;  %508 = vmatprep.subr.mxu1 %v396_v10  ;;  %v388_v18 = vld [vmem:[#allocation6 + $0x178] sm:$0xff]  ;;  %v385_v19 = vld [vmem:[#allocation6 + $0x160] sm:$0xff]  ;;  %v387_v20 = vld [vmem:[#allocation6 + $0x170] sm:$0xff]  ;;  %p1254_p2 = pnand %p1253_p10, %p1487_p0  ;;  %p1260_p6 = scmp.lt.s32.totalorder %s1258_s6, %s1252_s24 }
  0x66   : > { %432 = vmatpush1.msra.mxu0 %v393_v11  ;;  %509 = vmatpush1.msra.mxu1 %v395_v12  ;;  %v382_v21 = vld [vmem:[#allocation6 + $0x148] sm:$0xff]  ;;  %v384_v22 = vld [vmem:[#allocation6 + $0x158] sm:$0xff]  ;;  %v381_v23 = vld [vmem:[#allocation6 + $0x140] sm:$0xff] }
  0x67   : > { %433 = vmatprep.subr.mxu0 %v390_v13  ;;  %510 = vmatprep.subr.mxu1 %v392_v14  ;;  %v383_v24 = vld [vmem:[#allocation6 + $0x150] sm:$0xff]  ;;  %v378_v25 = vld [vmem:[#allocation6 + $0x128] sm:$0xff]  ;;  %v380_v26 = vld [vmem:[#allocation6 + $0x138] sm:$0xff]  ;;  %p1255_p11 = pneg %p1254_p2  ;;  %p1261_p9 = por %p1260_p6, %p1259_p7 }
  0x68   : > { %434 = vmatpush1.msra.mxu0 %v389_v15  ;;  %511 = vmatpush1.msra.mxu1 %v391_v16  ;;  %v377_v27 = vld [vmem:[#allocation6 + $0x120] sm:$0xff]  ;;  %v379_v28 = vld [vmem:[#allocation6 + $0x130] sm:$0xff]  ;;  %v374_v29 = vld [vmem:[#allocation6 + $0x108] sm:$0xff] }
  0x69   : > { %435 = vmatprep.subr.mxu0 %v386_v17  ;;  %512 = vmatprep.subr.mxu1 %v388_v18  ;;  %v376_v30 = vld [vmem:[#allocation6 + $0x118] sm:$0xff]  ;;  %v373_v31 = vld [vmem:[#allocation6 + $0x100] sm:$0xff]  ;;  %v375_v32 = vld [vmem:[#allocation6 + $0x110] sm:$0xff]  ;;  %p1262_p13 = pnand %p1261_p9, %p1255_p11 }
  0x6a   : > { %436 = vmatpush1.msra.mxu0 %v385_v19  ;;  %513 = vmatpush1.msra.mxu1 %v387_v20  ;;  %v370_v33 = vld [vmem:[#allocation6 + $0xe8] sm:$0xff]  ;;  %v372_v34 = vld [vmem:[#allocation6 + $0xf8] sm:$0xff]  ;;  %v369_v35 = vld [vmem:[#allocation6 + $0xe0] sm:$0xff] }
  0x6b   : > { %437 = vmatprep.subr.mxu0 %v382_v21  ;;  %514 = vmatprep.subr.mxu1 %v384_v22  ;;  %v371_v36 = vld [vmem:[#allocation6 + $0xf0] sm:$0xff]  ;;  %v366_v37 = vld [vmem:[#allocation6 + $0xc8] sm:$0xff]  ;;  %v368_v38 = vld [vmem:[#allocation6 + $0xd8] sm:$0xff] }
  0x6c   : > { %438 = vmatpush1.msra.mxu0 %v381_v23  ;;  %515 = vmatpush1.msra.mxu1 %v383_v24  ;;  %v365_v39 = vld [vmem:[#allocation6 + $0xc0] sm:$0xff]  ;;  %v367_v40 = vld [vmem:[#allocation6 + $0xd0] sm:$0xff]  ;;  %v362_v41 = vld [vmem:[#allocation6 + $0xa8] sm:$0xff] }
  0x6d   : > { %439 = vmatprep.subr.mxu0 %v378_v25  ;;  %516 = vmatprep.subr.mxu1 %v380_v26  ;;  %v364_v42 = vld [vmem:[#allocation6 + $0xb8] sm:$0xff]  ;;  %v361_v43 = vld [vmem:[#allocation6 + $0xa0] sm:$0xff]  ;;  %v363_v44 = vld [vmem:[#allocation6 + $0xb0] sm:$0xff] }
  0x6e   : > { %440 = vmatpush1.msra.mxu0 %v377_v27  ;;  %517 = vmatpush1.msra.mxu1 %v379_v28  ;;  %v358_v45 = vld [vmem:[#allocation6 + $0x88] sm:$0xff]  ;;  %v360_v46 = vld [vmem:[#allocation6 + $0x98] sm:$0xff]  ;;  %v357_v47 = vld [vmem:[#allocation6 + $0x80] sm:$0xff] }
  0x6f   : > { %441 = vmatprep.subr.mxu0 %v374_v29  ;;  %518 = vmatprep.subr.mxu1 %v376_v30  ;;  %v359_v48 = vld [vmem:[#allocation6 + $0x90] sm:$0xff]  ;;  %v354_v49 = vld [vmem:[#allocation6 + $0x68] sm:$0xff]  ;;  %v356_v50 = vld [vmem:[#allocation6 + $0x78] sm:$0xff] }
  0x70   : > { %442 = vmatpush1.msra.mxu0 %v373_v31  ;;  %519 = vmatpush1.msra.mxu1 %v375_v32  ;;  %v353_v51 = vld [vmem:[#allocation6 + $0x60] sm:$0xff]  ;;  %v355_v52 = vld [vmem:[#allocation6 + $0x70] sm:$0xff]  ;;  %v350_v53 = vld [vmem:[#allocation6 + $0x48] sm:$0xff] }
  0x71   : > { %443 = vmatprep.subr.mxu0 %v370_v33  ;;  %520 = vmatprep.subr.mxu1 %v372_v34  ;;  %v352_v54 = vld [vmem:[#allocation6 + $0x58] sm:$0xff]  ;;  %v349_v55 = vld [vmem:[#allocation6 + $0x40] sm:$0xff]  ;;  %v351_v56 = vld [vmem:[#allocation6 + $0x50] sm:$0xff] }
  0x72   : > { %444 = vmatpush1.msra.mxu0 %v369_v35  ;;  %521 = vmatpush1.msra.mxu1 %v371_v36  ;;  %v346_v57 = vld [vmem:[#allocation6 + $0x28] sm:$0xff]  ;;  %v348_v58 = vld [vmem:[#allocation6 + $0x38] sm:$0xff]  ;;  %v345_v59 = vld [vmem:[#allocation6 + $0x20] sm:$0xff] }
  0x73   : > { %445 = vmatprep.subr.mxu0 %v366_v37  ;;  %522 = vmatprep.subr.mxu1 %v368_v38  ;;  %v347_v60 = vld [vmem:[#allocation6 + $0x30] sm:$0xff]  ;;  %v342_v61 = vld [vmem:[#allocation6 + $0x8] sm:$0xff]  ;;  %v344_v62 = vld [vmem:[#allocation6 + $0x18] sm:$0xff] }
  0x74   : > { %446 = vmatpush1.msra.mxu0 %v365_v39  ;;  %523 = vmatpush1.msra.mxu1 %v367_v40  ;;  %v341_v63 = vld [vmem:[#allocation6] sm:$0xff]  ;;  %v343_v1 = vld [vmem:[#allocation6 + $0x10] sm:$0xff]  ;;  %v340_v7 = vld [vmem:[%s1526_s11 + $0x8] sm:$0xff] }
  0x75   : > { %447 = vmatprep.subr.mxu0 %v362_v41  ;;  %524 = vmatprep.subr.mxu1 %v364_v42  ;;  %v339_v2 = vld [vmem:[%s1526_s11] sm:$0xff] }
  0x76   : > { %448 = vmatpush1.msra.mxu0 %v361_v43  ;;  %525 = vmatpush1.msra.mxu1 %v363_v44  ;;  %v622_v3 = vld [vmem:[#allocation9 + $0xf8] sm:$0xff]  ;;  %v621_v8 = vld [vmem:[#allocation9 + $0xf0] sm:$0xff]  ;;  %v620_v12 = vld [vmem:[#allocation9 + $0xe8] sm:$0xff] }
  0x77   : > { %449 = vmatprep.subr.mxu0 %v358_v45  ;;  %526 = vmatprep.subr.mxu1 %v360_v46  ;;  %v654_v4 = vld [vmem:[#allocation9 + $0x1f8] sm:$0xff]  ;;  %v653_v9 = vld [vmem:[#allocation9 + $0x1f0] sm:$0xff]  ;;  %v652_v13 = vld [vmem:[#allocation9 + $0x1e8] sm:$0xff] }
  0x78   : > { %450 = vmatpush1.msra.mxu0 %v357_v47  ;;  %527 = vmatpush1.msra.mxu1 %v359_v48  ;;  %v606_v5 = vld [vmem:[#allocation9 + $0x78] sm:$0xff]  ;;  %v605_v10 = vld [vmem:[#allocation9 + $0x70] sm:$0xff]  ;;  %v604_v14 = vld [vmem:[#allocation9 + $0x68] sm:$0xff] }
  0x79   : > { %451 = vmatprep.subr.mxu0 %v354_v49  ;;  %528 = vmatprep.subr.mxu1 %v356_v50  ;;  %v638_v6 = vld [vmem:[#allocation9 + $0x178] sm:$0xff]  ;;  %v637_v11 = vld [vmem:[#allocation9 + $0x170] sm:$0xff]  ;;  %v636_v15 = vld [vmem:[#allocation9 + $0x168] sm:$0xff] }
  0x7a   : > { %452 = vmatpush1.msra.mxu0 %v353_v51  ;;  %529 = vmatpush1.msra.mxu1 %v355_v52  ;;  %v651_v16 = vld [vmem:[#allocation9 + $0x1e0] sm:$0xff]  ;;  %v618_v19 = vld [vmem:[#allocation9 + $0xd8] sm:$0xff]  ;;  %v617_v23 = vld [vmem:[#allocation9 + $0xd0] sm:$0xff] }
  0x7b   : > { %453 = vmatprep.subr.mxu0 %v350_v53  ;;  %530 = vmatprep.subr.mxu1 %v352_v54  ;;  %v603_v17 = vld [vmem:[#allocation9 + $0x60] sm:$0xff]  ;;  %v650_v20 = vld [vmem:[#allocation9 + $0x1d8] sm:$0xff]  ;;  %v649_v24 = vld [vmem:[#allocation9 + $0x1d0] sm:$0xff] }
  0x7c   : > { %454 = vmatpush1.msra.mxu0 %v349_v55  ;;  %531 = vmatpush1.msra.mxu1 %v351_v56  ;;  %v635_v18 = vld [vmem:[#allocation9 + $0x160] sm:$0xff]  ;;  %v602_v21 = vld [vmem:[#allocation9 + $0x58] sm:$0xff]  ;;  %v601_v25 = vld [vmem:[#allocation9 + $0x50] sm:$0xff] }
  0x7d   : > { %455 = vmatprep.subr.mxu0 %v346_v57  ;;  %532 = vmatprep.subr.mxu1 %v348_v58  ;;  %v634_v22 = vld [vmem:[#allocation9 + $0x158] sm:$0xff]  ;;  %v633_v26 = vld [vmem:[#allocation9 + $0x150] sm:$0xff]  ;;  %v616_v27 = vld [vmem:[#allocation9 + $0xc8] sm:$0xff] }
  0x7e   : > { %456 = vmatpush1.msra.mxu0 %v345_v59  ;;  %533 = vmatpush1.msra.mxu1 %v347_v60  ;;  %v648_v28 = vld [vmem:[#allocation9 + $0x1c8] sm:$0xff]  ;;  %v615_v31 = vld [vmem:[#allocation9 + $0xc0] sm:$0xff]  ;;  %v614_v35 = vld [vmem:[#allocation9 + $0xb8] sm:$0xff] }
  0x7f   : > { %457 = vmatprep.subr.mxu0 %v342_v61  ;;  %534 = vmatprep.subr.mxu1 %v344_v62  ;;  %v600_v29 = vld [vmem:[#allocation9 + $0x48] sm:$0xff]  ;;  %v647_v32 = vld [vmem:[#allocation9 + $0x1c0] sm:$0xff]  ;;  %v646_v36 = vld [vmem:[#allocation9 + $0x1b8] sm:$0xff] }
  0x80   : > { %458 = vmatpush1.msra.mxu0 %v341_v63  ;;  %535 = vmatpush1.msra.mxu1 %v343_v1  ;;  %v632_v30 = vld [vmem:[#allocation9 + $0x148] sm:$0xff]  ;;  %v599_v33 = vld [vmem:[#allocation9 + $0x40] sm:$0xff]  ;;  %v598_v37 = vld [vmem:[#allocation9 + $0x38] sm:$0xff] }
  0x81   : > { %492 = vmatmul.mubr.f32.vlgmr.msra.gmra.mxu0 %v339_v2  ;;  %569 = vmatmul.mubr.f32.vlgmr.msra.gmra.mxu1 %v339_v2  ;;  %v631_v34 = vld [vmem:[#allocation9 + $0x140] sm:$0xff]  ;;  %v630_v38 = vld [vmem:[#allocation9 + $0x138] sm:$0xff]  ;;  %v613_v39 = vld [vmem:[#allocation9 + $0xb0] sm:$0xff] }
  0x82   : > { %497 = vmatprep.mubr.f32.mxu0 %v1350_v0  ;;  %574 = vmatprep.mubr.f32.mxu1 %v1350_v0  ;;  %v619_v0 = vld [vmem:[#allocation9 + $0xe0] sm:$0xff]  ;;  %v645_v40 = vld [vmem:[#allocation9 + $0x1b0] sm:$0xff]  ;;  %v612_v43 = vld [vmem:[#allocation9 + $0xa8] sm:$0xff] }
  0x83   : > { %970 = vmatprep.subr.mxu0 %v622_v3  ;;  %1008 = vmatprep.subr.mxu1 %v654_v4  ;;  %v597_v41 = vld [vmem:[#allocation9 + $0x30] sm:$0xff]  ;;  %v644_v44 = vld [vmem:[#allocation9 + $0x1a8] sm:$0xff]  ;;  %v611_v47 = vld [vmem:[#allocation9 + $0xa0] sm:$0xff]  ;;  %v407_v4 = vlaneseq }
  0x84   : > { %971 = vmatpush3.msra.mxu0 %v606_v5  ;;  %1009 = vmatpush3.msra.mxu1 %v638_v6  ;;  %v629_v42 = vld [vmem:[#allocation9 + $0x130] sm:$0xff]  ;;  %v596_v45 = vld [vmem:[#allocation9 + $0x28] sm:$0xff]  ;;  %v643_v48 = vld [vmem:[#allocation9 + $0x1a0] sm:$0xff] }
  0x85   : > { %498 = vmatmul.mubr.f32.gmra.mxu0 %v340_v7  ;;  %575 = vmatmul.mubr.f32.gmra.mxu1 %v340_v7  ;;  %v628_v46 = vld [vmem:[#allocation9 + $0x128] sm:$0xff]  ;;  %v595_v49 = vld [vmem:[#allocation9 + $0x20] sm:$0xff]  ;;  %v610_v51 = vld [vmem:[#allocation9 + $0x98] sm:$0xff]  ;;  %v408_v5 = vshrl.u32 %v407_v4, 7 }
  0x86   : > { %972 = vmatprep.subr.mxu0 %v621_v8  ;;  %1010 = vmatprep.subr.mxu1 %v653_v9  ;;  %v627_v50 = vld [vmem:[#allocation9 + $0x120] sm:$0xff]  ;;  %v642_v52 = vld [vmem:[#allocation9 + $0x198] sm:$0xff]  ;;  %v609_v55 = vld [vmem:[#allocation9 + $0x90] sm:$0xff] }
  0x87   : > { %973 = vmatpush3.msra.mxu0 %v605_v10  ;;  %1011 = vmatpush3.msra.mxu1 %v637_v11  ;;  %v594_v53 = vld [vmem:[#allocation9 + $0x18] sm:$0xff]  ;;  %v641_v56 = vld [vmem:[#allocation9 + $0x190] sm:$0xff]  ;;  %v608_v59 = vld [vmem:[#allocation9 + $0x88] sm:$0xff]  ;;  %v409_v6 = vsub.s32 0, %v408_v5  ;;  %v417_v7 = vsub.s32 2, %v408_v5  ;;  %v413_v9 = vsub.s32 1, %v408_v5 }
  0x88   : > { %974 = vmatprep.subr.mxu0 %v620_v12  ;;  %1012 = vmatprep.subr.mxu1 %v652_v13  ;;  %v626_v54 = vld [vmem:[#allocation9 + $0x118] sm:$0xff]  ;;  %v593_v57 = vld [vmem:[#allocation9 + $0x10] sm:$0xff]  ;;  %v640_v60 = vld [vmem:[#allocation9 + $0x188] sm:$0xff]  ;;  %v421_v10 = vsub.s32 3, %v408_v5 }
  0x89   : > { %975 = vmatpush3.msra.mxu0 %v604_v14  ;;  %1013 = vmatpush3.msra.mxu1 %v636_v15  ;;  %v625_v58 = vld [vmem:[#allocation9 + $0x110] sm:$0xff]  ;;  %v592_v61 = vld [vmem:[#allocation9 + $0x8] sm:$0xff]  ;;  %v607_v63 = vld [vmem:[#allocation9 + $0x80] sm:$0xff] }
  0x8a   : > { %976 = vmatprep.subr.mxu0 %v619_v0  ;;  %1014 = vmatprep.subr.mxu1 %v651_v16  ;;  %v624_v62 = vld [vmem:[#allocation9 + $0x108] sm:$0xff]  ;;  %v639_v1 = vld [vmem:[#allocation9 + $0x180] sm:$0xff]  ;;  %v405_v8 = vld [vmem:[#allocation8] sm:$0xf] }
  0x8b   : > { %977 = vmatpush3.msra.mxu0 %v603_v17  ;;  %1015 = vmatpush3.msra.mxu1 %v635_v18  ;;  %v591_v2 = vld [vmem:[#allocation9] sm:$0xff]  ;;  %v410_v11 = vrot.slane %v405_v8, %v409_v6  ;;  %v418_v12 = vrot.slane %v405_v8, %v417_v7  ;;  %v414_v13 = vrot.slane %v405_v8, %v413_v9 }
  0x8c   : > { %978 = vmatprep.subr.mxu0 %v618_v19  ;;  %1016 = vmatprep.subr.mxu1 %v650_v20  ;;  %v623_v3 = vld [vmem:[#allocation9 + $0x100] sm:$0xff]  ;;  %v422_v14 = vrot.slane %v405_v8, %v421_v10 }
  0x8d   : > { %979 = vmatpush3.msra.mxu0 %v602_v21  ;;  %1017 = vmatpush3.msra.mxu1 %v634_v22 }
  0x8e   : > { %980 = vmatprep.subr.mxu0 %v617_v23  ;;  %1018 = vmatprep.subr.mxu1 %v649_v24 }
  0x8f   : > { %981 = vmatpush3.msra.mxu0 %v601_v25  ;;  %1019 = vmatpush3.msra.mxu1 %v633_v26 }
  0x90   : > { %982 = vmatprep.subr.mxu0 %v616_v27  ;;  %1020 = vmatprep.subr.mxu1 %v648_v28 }
  0x91   : > { %983 = vmatpush3.msra.mxu0 %v600_v29  ;;  %1021 = vmatpush3.msra.mxu1 %v632_v30 }
  0x92   : > { %984 = vmatprep.subr.mxu0 %v615_v31  ;;  %1022 = vmatprep.subr.mxu1 %v647_v32 }
  0x93   : > { %985 = vmatpush3.msra.mxu0 %v599_v33  ;;  %1023 = vmatpush3.msra.mxu1 %v631_v34 }
  0x94   : > { %986 = vmatprep.subr.mxu0 %v614_v35  ;;  %1024 = vmatprep.subr.mxu1 %v646_v36 }
  0x95   : > { %987 = vmatpush3.msra.mxu0 %v598_v37  ;;  %1025 = vmatpush3.msra.mxu1 %v630_v38 }
  0x96   : > { %988 = vmatprep.subr.mxu0 %v613_v39  ;;  %1026 = vmatprep.subr.mxu1 %v645_v40 }
  0x97   : > { %989 = vmatpush3.msra.mxu0 %v597_v41  ;;  %1027 = vmatpush3.msra.mxu1 %v629_v42 }
  0x98   : > { %990 = vmatprep.subr.mxu0 %v612_v43  ;;  %1028 = vmatprep.subr.mxu1 %v644_v44  ;;  %v962_v44 = vld [vmem:[%s1609_s4] ss:$0 sm:$0xff] }
  0x99   : > { %991 = vmatpush3.msra.mxu0 %v596_v45  ;;  %1029 = vmatpush3.msra.mxu1 %v628_v46 }
  0x9a   : > { %992 = vmatprep.subr.mxu0 %v611_v47  ;;  %1030 = vmatprep.subr.mxu1 %v643_v48 }
  0x9b   : > { %993 = vmatpush3.msra.mxu0 %v595_v49  ;;  %1031 = vmatpush3.msra.mxu1 %v627_v50 }
  0x9c   : > { %994 = vmatprep.subr.mxu0 %v610_v51  ;;  %1032 = vmatprep.subr.mxu1 %v642_v52 }
  0x9d   : > { %995 = vmatpush3.msra.mxu0 %v594_v53  ;;  %1033 = vmatpush3.msra.mxu1 %v626_v54 }
  0x9e   : > { %996 = vmatprep.subr.mxu0 %v609_v55  ;;  %1034 = vmatprep.subr.mxu1 %v641_v56 }
  0x9f   : > { %997 = vmatpush3.msra.mxu0 %v593_v57  ;;  %1035 = vmatpush3.msra.mxu1 %v625_v58 }
  0xa0   : > { %998 = vmatprep.subr.mxu0 %v608_v59  ;;  %1036 = vmatprep.subr.mxu1 %v640_v60 }
  0xa1   : > { %999 = vmatpush3.msra.mxu0 %v592_v61  ;;  %1037 = vmatpush3.msra.mxu1 %v624_v62 }
  0xa2   : > { %1000 = vmatprep.subr.mxu0 %v607_v63  ;;  %1038 = vmatprep.subr.mxu1 %v639_v1 }
  0xa3   : > { %1001 = vmatpush3.msra.mxu0 %v591_v2  ;;  %1039 = vmatpush3.msra.mxu1 %v623_v3 }
 0x141   : > { %v493_v15 = vpop.f32.mrf.mxu0  ;;  %v570_v0 = vpop.f32.mrf.mxu1 }
 0x142   : > { %v494_v16 = vadd.f32 %v493_v15, %v410_v11  ;;  %v571_v17 = vadd.f32 %v570_v0, %v418_v12 }
 0x143   : > { %v495_v18 = vpop.f32.mrf.mxu0  ;;  %v572_v19 = vpop.f32.mrf.mxu1 }
 0x144   : > { %v496_v20 = vadd.f32 %v495_v18, %v414_v13  ;;  %v573_v21 = vadd.f32 %v572_v19, %v422_v14  ;;  %v581_v26 = vmax.f32 %v494_v16, 0.0  ;;  %v583_v27 = vmax.f32 %v571_v17, 0.0 }
 0x145   : > { %v499_v22 = vpop.f32.mrf.mxu0  ;;  %v576_v23 = vpop.f32.mrf.mxu1 }
 0x146   : > { %v582_v24 = vmax.f32 %v496_v20, 0.0  ;;  %v584_v25 = vmax.f32 %v573_v21, 0.0  ;;  %v500_v28 = vadd.f32 %v499_v22, %v410_v11  ;;  %v577_v29 = vadd.f32 %v576_v23, %v418_v12 }
 0x147   : > { %v501_v30 = vpop.f32.mrf.mxu0  ;;  %v578_v31 = vpop.f32.mrf.mxu1 }
 0x148   : > { %v502_v32 = vadd.f32 %v501_v30, %v414_v13  ;;  %v579_v33 = vadd.f32 %v578_v31, %v422_v14  ;;  %719 = vmatprep.mubr.f32.mxu0 %v582_v24  ;;  %794 = vmatprep.mubr.f32.mxu1 %v584_v25  ;;  %v585_v36 = vmax.f32 %v500_v28, 0.0  ;;  %v587_v37 = vmax.f32 %v577_v29, 0.0 }
 0x149   : > { %720 = vmatmul.mubr.f32.vlgmr.msra.gmra.mxu0 %v581_v26  ;;  %795 = vmatmul.mubr.f32.vlgmr.msra.gmra.mxu1 %v583_v27 }
 0x14a   : > { %v586_v34 = vmax.f32 %v502_v32, 0.0  ;;  %v588_v35 = vmax.f32 %v579_v33, 0.0 }
 0x14c   : > { %724 = vmatprep.mubr.f32.mxu0 %v586_v34  ;;  %799 = vmatprep.mubr.f32.mxu1 %v588_v35 }
 0x14d   : > { %725 = vmatmul.mubr.f32.gmra.mxu0 %v585_v36  ;;  %800 = vmatmul.mubr.f32.gmra.mxu1 %v587_v37 }
 0x209   : > { %v1002_v38 = vpop.f32.mrf.mxu0  ;;  %v1040_v39 = vpop.f32.mrf.mxu1 }
 0x20b   : > { %v1003_v40 = vpop.f32.mrf.mxu0  ;;  %v1041_v41 = vpop.f32.mrf.mxu1 }
 0x20c   : > { %v1004_v42 = vadd.f32 %v1003_v40, %v1002_v38  ;;  %v1042_v43 = vadd.f32 %v1041_v41, %v1040_v39 }
 0x20d   : > { %v1005_v45 = vpop.f32.mrf.mxu0  ;;  %v1043_v46 = vpop.f32.mrf.mxu1 }
 0x20e   : > { %v797_v47 = vadd.f32 %v1042_v43, %v1004_v42 }
 0x20f   : > { %v1006_v48 = vpop.f32.mrf.mxu0  ;;  %v1044_v49 = vpop.f32.mrf.mxu1 }
 0x210   : > { %v805_v50 = vadd.f32 %v962_v44, %v797_v47  ;;  %v1007_v51 = vadd.f32 %v1006_v48, %v1005_v45  ;;  %v1045_v52 = vadd.f32 %v1044_v49, %v1043_v46 }
 0x212   : > { %814 = vst [vmem:[%s320_s30] sm:$0xff] %v805_v50  ;;  %v802_v53 = vadd.f32 %v1045_v52, %v1007_v51 }
 0x214   : > { %v806_v54 = vadd.f32 %v962_v44, %v802_v53 }
 0x216   : > { %815 = vst [vmem:[%s320_s30 + $0x8] sm:$0xff] %v806_v54 }
 0x217   : > { %1265 = shalt.err (!%p1262_p13)
}
 0x218   : > { %s1266_s1 = scalar_lea.hbm %s1557_s17, 256  ;;  %s1270_s26 = scalar_lea.hbm %s1610_s5, 512 }
 0x219   : > { %p1267_p1 = scmp.ne.s32.totalorder %s1557_s17, %s1266_s1  ;;  %p1271_p12 = scmp.lt.s32.totalorder %s1557_s17, %s1610_s5 }
 0x21a   : > { %p1272_p5 = scmp.lt.s32.totalorder %s1270_s26, %s1266_s1 }
 0x21b   : > { %p1268_p4 = pnand %p1267_p1, %p1487_p0 }
 0x21c   : > { %p1273_p3 = por %p1272_p5, %p1271_p12 }
 0x21d   : > { %p1269_p8 = pneg %p1268_p4 }
 0x21f   : > { %p1274_p10 = pnand %p1273_p3, %p1269_p8 }
 0x221   : > { %1277 = shalt.err (!%p1274_p10)
}
 0x222   : > { %s1352_s10 = smov 128   ;;  %s1353_s27 = smov 8  }
 0x223   : > { %1060 = dma.vmem_to_hbm [thread:$0]  (%p1487_p0), %s1552_s9, 256, %s1557_s17, %s817_s14, %s1352_s10, %s1352_s10, %s1353_s27  }
 0x224 PF: > { %s845_s13 = sand.u32 1, %s1320_s18   ;;  %p1632_p2 = scmp.ne.s32.totalorder %s1621_s29, 0 }
 0x225   : > { %p1633_p11 = scmp.ge.s32.totalorder %s1340_s23, 2  ;;  %s846_s24 = scalar_lea.sflag [#allocation5], %s845_s13 }
 0x227   : > { %p1077_p7 = pnand %p1633_p11, %p1632_p2 }
 0x229   : > { %p1078_p6 = pneg %p1077_p7 }
 0x22b   : > { %1315 = dma.done.wait (%p1078_p6), %s846_s24, 256  }
 0x22c   : > { %1317 = vsyncadd (%p1078_p6), %s846_s24, 4294967040  ;;  %s23_s23 = sadd.s32 1, %s1340_s23   ;;  %s1634_s18 = smov %s1324_s19 }
 0x22d   : > { %p20_p9 = scmp.ge.s32.totalorder %s23_s23, 4   ;;  %s1635_s19 = smov %s1328_s20 }
 0x22e   : > { %s1636_s20 = smov %s1499_s25  ;;  %s1637_s21 = smov %s1336_s22 }
 0x22f   : > { %s1638_s22 = smov %s1640_s15  ;;  %22 = sbr.rel (!%p20_p9) target bundleno = 10 (0xa), region = 108 }
 0x234   :  { %851 = vsyncpa [#allocation4], 1 }
 0x235   :  { %853 = vsyncpa [#allocation4 + $0x1], 1 }
 0x236   :  { %854 = vsyncpa [#allocation7], 1 }
 0x237   :  { %855 = vsyncpa [#allocation10], 1 }
 0x238   :  { %856 = vsyncpa [#allocation5], 1 }
 0x239   :  { %858 = vsyncpa [#allocation5 + $0x1], 1 }

</bundles_post_ra>
